<compile_context>
chip_gen: v7x
topology: tpu7x:2x2x1
jax: 0.10.0
libtpu: 0.0.40
codegen_flags: <defaults>
</compile_context>

<pallas_src>
import functools

import jax
import jax.numpy as jnp
from jax import lax
from jax.experimental import pallas as pl
from jax.experimental.pallas import tpu as pltpu

# ---- synthetic "settings" (small shapes) ----
B = 2             # batch_size
MAX_VARS = 8      # max_variables
NUM_CLAUSES = 6
EMB = 32          # embedding_dim
NUM_GROUND = 4    # num_ground_variables
GROUND_DIM = 4    # ground_dim (== num_ground_variables)
MAX_ITERS = 2
NUM_CLASSES = 3

BM = B * MAX_VARS  # flattened (batch * variables) row count for shared-weight matmuls


def _batch_eq_classifier_kernel(
    # inputs
    x_ref,        # (B, MAX_VARS, NUM_CLAUSES) f32   dense CNF adjacency (v_mat), entries {-1,0,1}
    oind_ref,     # (B,) i32 in SMEM                 output_ind (1-based, possibly negated)
    ground_ref,   # (2*MAX_VARS, EMB) f32  rows [:MV]=ground annotations, [MV:]=ground@Wg_g+bg
    bf01_ref,     # (2, EMB, 2*EMB) bf16   [0]=[B0ᵀ|B1ᵀ] (c_block), [1]=[F0ᵀ|F1ᵀ] (v_block)
    gruw_ref,     # (2, EMB, 3*EMB) bf16   [0]=[Wzᵀ|Wrᵀ|Wᵀ], [1]=[Uzᵀ|Urᵀ|0]
    wgeuh_ref,    # (2, EMB, EMB)   bf16   [0]=ground-combiner emb weight, [1]=Uᵀ
    bias_ref,     # (3, 3*EMB) f32         [0,:E]=cb, [1,:E]=vb, [2]=[b_Uz|b_Ur|b_U]
    wsb_ref,      # (EMB+1, NUM_CLASSES) f32  softmax weight with bias folded in as last row
    # outputs
    logits_ref,   # (B, NUM_CLASSES) f32
):
  f32, bf16 = jnp.float32, jnp.bfloat16
  dot = functools.partial(jnp.einsum, preferred_element_type=f32)

  # ---------------- hoisted, loop-invariant prep ----------------
  x = x_ref[...]
  pos_x = jnp.clip(x, 0.0, 1.0)            # (B, MV, C)  clips computed once
  neg_x = -jnp.clip(x, -1.0, 0.0)
  # one hoisted transpose replaces the old wrapper-side cmat input (extra HBM array + DMA);
  # pos_xT/neg_xT are the clause-side orientation, reused by both unrolled iterations.
  pos_xT = jnp.swapaxes(pos_x, 1, 2).astype(bf16)   # (B, C, MV)
  neg_xT = jnp.swapaxes(neg_x, 1, 2).astype(bf16)
  pos_xb = pos_x.astype(bf16)                       # (B, MV, C)  exact in bf16 ({-1,0,1})
  neg_xb = neg_x.astype(bf16)

  gp = ground_ref[...]
  V = jnp.tile(gp[:MAX_VARS], (B, 1))               # (BM, E) initial variable embeddings
  gcontrib = jnp.tile(gp[MAX_VARS:], (B, 1))        # (BM, E) ground-combiner ground term (+bg)

  B01 = bf01_ref[0]                                 # (E, 2E) bf16
  F01 = bf01_ref[1]                                 # (E, 2E) bf16
  Wzrh = gruw_ref[0]                                # (E, 3E) bf16
  Uzr = gruw_ref[1][:, :2 * EMB]                    # (E, 2E) bf16 (zero padding dropped)
  Wge = wgeuh_ref[0]                                # (E, E)  bf16
  Uh = wgeuh_ref[1]                                 # (E, E)  bf16

  bias = bias_ref[...]
  cb_b = jnp.broadcast_to(bias[0:1, :EMB][None], (B, NUM_CLAUSES, EMB))
  vb_b = jnp.broadcast_to(bias[1:2, :EMB][None], (B, MAX_VARS, EMB))
  bzr_b = jnp.broadcast_to(bias[2:3, :2 * EMB], (BM, 2 * EMB))
  bh_b = jnp.broadcast_to(bias[2:3, 2 * EMB:], (BM, EMB))

  # ---------------- message-passing iterations (unrolled, MAX_ITERS is tiny) ----------------
  for _ in range(MAX_ITERS):
    v_bf = V.astype(bf16)                                         # (BM, E)

    # variables -> clauses: fused pos/neg projection (one lane-dense N=2E matmul), then the
    # per-sign adjacency contraction.
    y12 = dot('me,ef->mf', v_bf, B01)                             # (BM, 2E) f32
    y1 = y12[:, :EMB].astype(bf16).reshape(B, MAX_VARS, EMB)
    y2 = y12[:, EMB:].astype(bf16).reshape(B, MAX_VARS, EMB)
    c = dot('bcm,bme->bce', pos_xT, y1) + dot('bcm,bme->bce', neg_xT, y2)
    c = jnp.tanh(c + cb_b)                                        # (B, C, E)

    # clauses -> variables: fused pos/neg projection, then adjacency contraction.
    pcnc = dot('bce,ef->bcf', c.astype(bf16), F01)                # (B, C, 2E) f32
    pc = pcnc[..., :EMB].astype(bf16)
    nc = pcnc[..., EMB:].astype(bf16)
    nv = dot('bmc,bce->bme', pos_xb, pc) + dot('bmc,bce->bme', neg_xb, nc)
    v_emb = jnp.tanh(nv + vb_b).reshape(BM, EMB)                  # (BM, E)

    # ground combiner (ground-side term + its bias precomputed in the wrapper).
    av = jnp.tanh(dot('me,ef->mf', v_emb.astype(bf16), Wge) + gcontrib)

    # GRU with fused gates: one N=3E and one N=2E matmul plus the r-gated U matmul.
    gw = dot('me,ef->mf', av.astype(bf16), Wzrh)                  # (BM, 3E)
    gu = dot('me,ef->mf', v_bf, Uzr)                              # (BM, 2E)
    zr = jax.nn.sigmoid(gw[:, :2 * EMB] + gu + bzr_b)             # (BM, 2E)
    z = zr[:, :EMB]
    r = zr[:, EMB:]
    hu = dot('me,ef->mf', (r * V).astype(bf16), Uh)               # (BM, E)
    h_tilda = jnp.tanh(gw[:, 2 * EMB:] + hu + bh_b)
    V = (1.0 - z) * V + z * h_tilda                               # (BM, E) f32

  # ---------------- classifier head ----------------
  # gather row (b*MAX_VARS + |output_ind[b]| - 1) via a one-hot matmul driven by SMEM scalars.
  rows = []
  for b in range(B):
    fidx = jnp.abs(oind_ref[b]) - 1 + b * MAX_VARS
    rows.append((lax.broadcasted_iota(jnp.int32, (1, BM), 1) == fidx).astype(f32))
  onehot = jnp.concatenate(rows, axis=0)                          # (B, BM)
  out = jnp.dot(onehot, V, preferred_element_type=f32)            # (B, E)  exact row select

  wsb = wsb_ref[...]
  logits_ref[...] = jnp.dot(out, wsb[:EMB], preferred_element_type=f32) + wsb[EMB:]


def make_ground_annotations():
  # moving_ground=False, use_ground=True branch of BatchEncoder.__init__
  base = jnp.eye(NUM_GROUND + 1, dtype=jnp.float32)                      # (G+1, G+1)
  dup = jnp.tile(base[-1][None, :], (MAX_VARS - NUM_GROUND - 1, 1))      # (MV-G-1, G+1)
  exp = jnp.concatenate([base, dup], axis=0)                             # (MV, G+1)
  pad = jnp.zeros((MAX_VARS, EMB - GROUND_DIM - 1), dtype=jnp.float32)   # expand_dim_const
  return jnp.concatenate([exp, pad], axis=1)                             # (MV, E)


def init_params(key):
  def nrm(k, shape, scale=0.1):
    return scale * jax.random.normal(k, shape, jnp.float32)
  ks = jax.random.split(key, 19)
  return dict(
      bpn=nrm(ks[0], (2, EMB, EMB)),          # backwards_pos_neg (c_block), nn_init.normal
      fpn=nrm(ks[1], (2, EMB, EMB)),          # forward_pos_neg   (v_block)
      cb=nrm(ks[2], (1, EMB)),                # clause bias
      vb=nrm(ks[3], (1, EMB)),                # variable bias
      wg_g=nrm(ks[4], (GROUND_DIM, EMB)),     # ground combiner (synthetic), (in,out)
      wg_e=nrm(ks[5], (EMB, EMB)),
      bg=nrm(ks[6], (1, EMB)),
      wz=nrm(ks[7], (EMB, EMB)), uz=nrm(ks[8], (EMB, EMB)), buz=nrm(ks[9], (1, EMB)),
      wr=nrm(ks[10], (EMB, EMB)), ur=nrm(ks[11], (EMB, EMB)), bur=nrm(ks[12], (1, EMB)),
      wh=nrm(ks[13], (EMB, EMB)), uh=nrm(ks[14], (EMB, EMB)), buh=nrm(ks[15], (1, EMB)),
      ws=nrm(ks[16], (EMB, NUM_CLASSES)),     # softmax_layer weight (already (in,out))
      bs=nrm(ks[17], (1, NUM_CLASSES)),
      ground=make_ground_annotations(),
  )


def pack_params(p):
  """Wrapper-side parameter prep (done once, outside the kernel): pre-transpose nn.Linear
  weights to (in,out), fuse pos/neg and GRU-gate weights along the output (lane) axis,
  pack biases, precompute the loop-invariant ground-combiner term, cast MXU weights to bf16."""
  f32, bf16 = jnp.float32, jnp.bfloat16
  # c_block / v_block: [pos | neg] pre-transposed -> (E, 2E)
  b01 = jnp.concatenate([p['bpn'][0].T, p['bpn'][1].T], axis=1)
  f01 = jnp.concatenate([p['fpn'][0].T, p['fpn'][1].T], axis=1)
  bf01 = jnp.stack([b01, f01]).astype(bf16)                              # (2, E, 2E)
  # GRU gates: [Wz|Wr|W] and [Uz|Ur|0] (zero pad keeps a uniform leading-axis stack)
  wzrh = jnp.concatenate([p['wz'].T, p['wr'].T, p['wh'].T], axis=1)
  uzr = jnp.concatenate([p['uz'].T, p['ur'].T, jnp.zeros((EMB, EMB), f32)], axis=1)
  gru_w = jnp.stack([wzrh, uzr]).astype(bf16)                            # (2, E, 3E)
  wge_uh = jnp.stack([p['wg_e'], p['uh'].T]).astype(bf16)                # (2, E, E)
  # biases: row0=[cb|0|0], row1=[vb|0|0], row2=[b_Uz|b_Ur|b_U]
  zero2 = jnp.zeros((1, 2 * EMB), f32)
  bias = jnp.concatenate([
      jnp.concatenate([p['cb'], zero2], axis=1),
      jnp.concatenate([p['vb'], zero2], axis=1),
      jnp.concatenate([p['buz'], p['bur'], p['buh']], axis=1)], axis=0)  # (3, 3E)
  # ground: [annotations ; precomputed ground-combiner ground term (+ its bias)]
  ground = p['ground']
  gcontrib = ground[:, :GROUND_DIM] @ p['wg_g'] + p['bg']
  ground_pack = jnp.concatenate([ground, gcontrib], axis=0)              # (2*MV, E)
  # classifier weight with bias folded in as last row
  wsb = jnp.concatenate([p['ws'], p['bs']], axis=0)                      # (E+1, NC)
  return dict(bf01=bf01, gru_w=gru_w, wge_uh=wge_uh, bias=bias,
              ground=ground_pack, wsb=wsb)


@jax.jit
def batch_eq_classifier(x, output_ind, packed):
  """Forward pass of BatchEqClassifier. Returns (logits, aux_losses)."""
  x = x.astype(jnp.float32)
  oind = output_ind.reshape(B).astype(jnp.int32)
  vmem = pltpu.MemorySpace.VMEM
  smem = pltpu.MemorySpace.SMEM
  logits = pl.pallas_call(
      _batch_eq_classifier_kernel,
      out_shape=jax.ShapeDtypeStruct((B, NUM_CLASSES), jnp.float32),
      in_specs=[
          pl.BlockSpec(memory_space=vmem),   # x (adjacency)
          pl.BlockSpec(memory_space=smem),   # output_ind scalars
          pl.BlockSpec(memory_space=vmem),   # ground pack
          pl.BlockSpec(memory_space=vmem),   # fused c_block/v_block
          pl.BlockSpec(memory_space=vmem),   # fused GRU W / U
          pl.BlockSpec(memory_space=vmem),   # ground-combiner emb weight / U_h
          pl.BlockSpec(memory_space=vmem),   # packed biases
          pl.BlockSpec(memory_space=vmem),   # classifier weight+bias
      ],
      out_specs=pl.BlockSpec(memory_space=vmem),
  )(x, oind, packed['ground'], packed['bf01'], packed['gru_w'],
    packed['wge_uh'], packed['bias'], packed['wsb'])
  aux_losses = jnp.zeros((B,), jnp.float32)  # matches Variable(torch.zeros(len(variables)))
  return logits, aux_losses


if __name__ == "__main__":
  key = jax.random.PRNGKey(0)
  k_param, k_x, k_ind = jax.random.split(key, 3)

  params = init_params(k_param)
  packed = pack_params(params)

  # CNF adjacency with entries in {-1, 0, +1}
  x = jax.random.randint(k_x, (B, MAX_VARS, NUM_CLAUSES), -1, 2).astype(jnp.float32)
  # output variable indices, 1-based, possibly negated (sign is stripped by abs())
  output_ind = jax.random.randint(k_ind, (B,), 1, MAX_VARS + 1) * jnp.array([1, -1])

  logits, aux = batch_eq_classifier(x, output_ind, packed)
  logits = jax.block_until_ready(logits)
  aux = jax.block_until_ready(aux)

  assert logits.shape == (B, NUM_CLASSES) and aux.shape == (B,)
  assert bool(jnp.all(jnp.isfinite(logits)))
  print("KERNEL_OK")
</pallas_src>

<mosaic_0001>
module attributes {stable_mosaic.version = 11 : i64} {
  func.func @_batch_eq_classifier_kernel(%arg0: memref<2x8x6xf32, #tpu.memory_space<vmem>>, %arg1: memref<2xi32, #tpu.memory_space<smem>>, %arg2: memref<16x32xf32, #tpu.memory_space<vmem>>, %arg3: memref<2x32x64xbf16, #tpu.memory_space<vmem>>, %arg4: memref<2x32x96xbf16, #tpu.memory_space<vmem>>, %arg5: memref<2x32x32xbf16, #tpu.memory_space<vmem>>, %arg6: memref<3x96xf32, #tpu.memory_space<vmem>>, %arg7: memref<33x3xf32, #tpu.memory_space<vmem>>, %arg8: memref<2x3xf32, #tpu.memory_space<vmem>>) attributes {dimension_semantics = [], scalar_prefetch = 0 : i64, scratch_operands = 0 : i64, tpu.core_type = #tpu.core_type<tc>} {
    %c0 = arith.constant 0 : index
    %c0_0 = arith.constant 0 : index
    %c0_1 = arith.constant 0 : index
    %0 = vector.load %arg0[%c0, %c0_0, %c0_1] : memref<2x8x6xf32, #tpu.memory_space<vmem>>, vector<2x8x6xf32>
    %cst = arith.constant 0.000000e+00 : f32
    %cst_2 = arith.constant 1.000000e+00 : f32
    %1 = vector.broadcast %cst : f32 to vector<2x8x6xf32>
    %2 = arith.maximumf %1, %0 : vector<2x8x6xf32>
    %3 = vector.broadcast %cst_2 : f32 to vector<2x8x6xf32>
    %4 = arith.minimumf %3, %2 : vector<2x8x6xf32>
    %cst_3 = arith.constant -1.000000e+00 : f32
    %cst_4 = arith.constant 0.000000e+00 : f32
    %5 = vector.broadcast %cst_3 : f32 to vector<2x8x6xf32>
    %6 = arith.maximumf %5, %0 : vector<2x8x6xf32>
    %7 = vector.broadcast %cst_4 : f32 to vector<2x8x6xf32>
    %8 = arith.minimumf %7, %6 : vector<2x8x6xf32>
    %cst_5 = arith.constant 0.000000e+00 : f32
    %9 = vector.broadcast %cst_5 : f32 to vector<2x8x6xf32>
    %10 = arith.subf %9, %8 : vector<2x8x6xf32>
    %11 = tpu.transpose %4, [0, 2, 1] : vector<2x8x6xf32> -> vector<2x6x8xf32>
    %12 = arith.truncf %11 : vector<2x6x8xf32> to vector<2x6x8xbf16>
    %13 = tpu.transpose %10, [0, 2, 1] : vector<2x8x6xf32> -> vector<2x6x8xf32>
    %14 = arith.truncf %13 : vector<2x6x8xf32> to vector<2x6x8xbf16>
    %15 = arith.truncf %4 : vector<2x8x6xf32> to vector<2x8x6xbf16>
    %16 = arith.truncf %10 : vector<2x8x6xf32> to vector<2x8x6xbf16>
    %c0_6 = arith.constant 0 : index
    %c0_7 = arith.constant 0 : index
    %17 = vector.load %arg2[%c0_6, %c0_7] : memref<16x32xf32, #tpu.memory_space<vmem>>, vector<16x32xf32>
    %18 = vector.extract_strided_slice %17 {offsets = [0, 0], sizes = [8, 32], strides = [1, 1]} : vector<16x32xf32> to vector<8x32xf32>
    %19 = tpu.concatenate %18, %18 in 0 : vector<8x32xf32>, vector<8x32xf32> -> vector<16x32xf32>
    %20 = vector.extract_strided_slice %17 {offsets = [8, 0], sizes = [8, 32], strides = [1, 1]} : vector<16x32xf32> to vector<8x32xf32>
    %21 = tpu.concatenate %20, %20 in 0 : vector<8x32xf32>, vector<8x32xf32> -> vector<16x32xf32>
    %c0_8 = arith.constant 0 : index
    %c0_9 = arith.constant 0 : index
    %c0_10 = arith.constant 0 : index
    %22 = vector.load %arg3[%c0_8, %c0_9, %c0_10] : memref<2x32x64xbf16, #tpu.memory_space<vmem>>, vector<1x32x64xbf16>
    %23 = vector.shape_cast %22 : vector<1x32x64xbf16> to vector<32x64xbf16>
    %c1 = arith.constant 1 : index
    %c0_11 = arith.constant 0 : index
    %c0_12 = arith.constant 0 : index
    %24 = vector.load %arg3[%c1, %c0_11, %c0_12] : memref<2x32x64xbf16, #tpu.memory_space<vmem>>, vector<1x32x64xbf16>
    %25 = vector.shape_cast %24 : vector<1x32x64xbf16> to vector<32x64xbf16>
    %c0_13 = arith.constant 0 : index
    %c0_14 = arith.constant 0 : index
    %c0_15 = arith.constant 0 : index
    %26 = vector.load %arg4[%c0_13, %c0_14, %c0_15] : memref<2x32x96xbf16, #tpu.memory_space<vmem>>, vector<1x32x96xbf16>
    %27 = vector.shape_cast %26 : vector<1x32x96xbf16> to vector<32x96xbf16>
    %c1_16 = arith.constant 1 : index
    %c0_17 = arith.constant 0 : index
    %c0_18 = arith.constant 0 : index
    %28 = vector.load %arg4[%c1_16, %c0_17, %c0_18] : memref<2x32x96xbf16, #tpu.memory_space<vmem>>, vector<1x32x96xbf16>
    %29 = vector.shape_cast %28 : vector<1x32x96xbf16> to vector<32x96xbf16>
    %30 = vector.extract_strided_slice %29 {offsets = [0, 0], sizes = [32, 64], strides = [1, 1]} : vector<32x96xbf16> to vector<32x64xbf16>
    %c0_19 = arith.constant 0 : index
    %c0_20 = arith.constant 0 : index
    %c0_21 = arith.constant 0 : index
    %31 = vector.load %arg5[%c0_19, %c0_20, %c0_21] : memref<2x32x32xbf16, #tpu.memory_space<vmem>>, vector<1x32x32xbf16>
    %32 = vector.shape_cast %31 : vector<1x32x32xbf16> to vector<32x32xbf16>
    %c1_22 = arith.constant 1 : index
    %c0_23 = arith.constant 0 : index
    %c0_24 = arith.constant 0 : index
    %33 = vector.load %arg5[%c1_22, %c0_23, %c0_24] : memref<2x32x32xbf16, #tpu.memory_space<vmem>>, vector<1x32x32xbf16>
    %34 = vector.shape_cast %33 : vector<1x32x32xbf16> to vector<32x32xbf16>
    %c0_25 = arith.constant 0 : index
    %c0_26 = arith.constant 0 : index
    %35 = vector.load %arg6[%c0_25, %c0_26] : memref<3x96xf32, #tpu.memory_space<vmem>>, vector<3x96xf32>
    %36 = vector.extract_strided_slice %35 {offsets = [0, 0], sizes = [1, 32], strides = [1, 1]} : vector<3x96xf32> to vector<1x32xf32>
    %37 = vector.shape_cast %36 : vector<1x32xf32> to vector<1x1x32xf32>
    %38 = vector.shape_cast %37 : vector<1x1x32xf32> to vector<1x1x32xf32>
    %39 = vector.broadcast %38 : vector<1x1x32xf32> to vector<2x6x32xf32>
    %40 = vector.extract_strided_slice %35 {offsets = [1, 0], sizes = [1, 32], strides = [1, 1]} : vector<3x96xf32> to vector<1x32xf32>
    %41 = vector.shape_cast %40 : vector<1x32xf32> to vector<1x1x32xf32>
    %42 = vector.shape_cast %41 : vector<1x1x32xf32> to vector<1x1x32xf32>
    %43 = vector.broadcast %42 : vector<1x1x32xf32> to vector<2x8x32xf32>
    %44 = vector.extract_strided_slice %35 {offsets = [2, 0], sizes = [1, 64], strides = [1, 1]} : vector<3x96xf32> to vector<1x64xf32>
    %45 = vector.shape_cast %44 : vector<1x64xf32> to vector<1x64xf32>
    %46 = vector.broadcast %45 : vector<1x64xf32> to vector<16x64xf32>
    %47 = vector.extract_strided_slice %35 {offsets = [2, 64], sizes = [1, 32], strides = [1, 1]} : vector<3x96xf32> to vector<1x32xf32>
    %48 = vector.shape_cast %47 : vector<1x32xf32> to vector<1x32xf32>
    %49 = vector.broadcast %48 : vector<1x32xf32> to vector<16x32xf32>
    %50 = arith.truncf %19 : vector<16x32xf32> to vector<16x32xbf16>
    "tpu.trace_start"() <{level = 10 : i32, message = "me,ef->mf"}> : () -> ()
    %cst_27 = arith.constant dense<0.000000e+00> : vector<16x64xf32>
    %51 = tpu.matmul %50, %23, %cst_27 {dimension_numbers = #tpu.dot_dimension_numbers<[1], [0], [0], [1], [0, 0, 1, 1], [], []>} : vector<16x32xbf16>, vector<32x64xbf16>, vector<16x64xf32> -> vector<16x64xf32>
    "tpu.trace_stop"() : () -> ()
    %52 = vector.extract_strided_slice %51 {offsets = [0, 0], sizes = [16, 32], strides = [1, 1]} : vector<16x64xf32> to vector<16x32xf32>
    %53 = arith.truncf %52 : vector<16x32xf32> to vector<16x32xbf16>
    %54 = vector.shape_cast %53 : vector<16x32xbf16> to vector<2x8x32xbf16>
    %55 = vector.extract_strided_slice %51 {offsets = [0, 32], sizes = [16, 32], strides = [1, 1]} : vector<16x64xf32> to vector<16x32xf32>
    %56 = arith.truncf %55 : vector<16x32xf32> to vector<16x32xbf16>
    %57 = vector.shape_cast %56 : vector<16x32xbf16> to vector<2x8x32xbf16>
    "tpu.trace_start"() <{level = 10 : i32, message = "bcm,bme->bce"}> : () -> ()
    %cst_28 = arith.constant dense<0.000000e+00> : vector<2x6x32xf32>
    %58 = tpu.matmul %12, %54, %cst_28 {dimension_numbers = #tpu.dot_dimension_numbers<[2], [1], [1], [2], [0, 0, 0, 1, 1, 2], [0], [0]>} : vector<2x6x8xbf16>, vector<2x8x32xbf16>, vector<2x6x32xf32> -> vector<2x6x32xf32>
    %cst_29 = arith.constant dense<0.000000e+00> : vector<2x6x32xf32>
    %59 = tpu.matmul %14, %57, %cst_29 {dimension_numbers = #tpu.dot_dimension_numbers<[2], [1], [1], [2], [0, 0, 0, 1, 1, 2], [0], [0]>} : vector<2x6x8xbf16>, vector<2x8x32xbf16>, vector<2x6x32xf32> -> vector<2x6x32xf32>
    "tpu.trace_stop"() : () -> ()
    %60 = arith.addf %58, %59 : vector<2x6x32xf32>
    %61 = arith.addf %60, %39 : vector<2x6x32xf32>
    %62 = math.tanh %61 : vector<2x6x32xf32>
    %63 = arith.truncf %62 : vector<2x6x32xf32> to vector<2x6x32xbf16>
    "tpu.trace_start"() <{level = 10 : i32, message = "bce,ef->bcf"}> : () -> ()
    %cst_30 = arith.constant dense<0.000000e+00> : vector<2x6x64xf32>
    %64 = tpu.matmul %63, %25, %cst_30 {dimension_numbers = #tpu.dot_dimension_numbers<[2], [0], [0, 1], [1], [0, 0, 0, 1, 1, 1], [], []>} : vector<2x6x32xbf16>, vector<32x64xbf16>, vector<2x6x64xf32> -> vector<2x6x64xf32>
    "tpu.trace_stop"() : () -> ()
    %65 = vector.extract_strided_slice %64 {offsets = [0, 0, 0], sizes = [2, 6, 32], strides = [1, 1, 1]} : vector<2x6x64xf32> to vector<2x6x32xf32>
    %66 = arith.truncf %65 : vector<2x6x32xf32> to vector<2x6x32xbf16>
    %67 = vector.extract_strided_slice %64 {offsets = [0, 0, 32], sizes = [2, 6, 32], strides = [1, 1, 1]} : vector<2x6x64xf32> to vector<2x6x32xf32>
    %68 = arith.truncf %67 : vector<2x6x32xf32> to vector<2x6x32xbf16>
    "tpu.trace_start"() <{level = 10 : i32, message = "bmc,bce->bme"}> : () -> ()
    %cst_31 = arith.constant dense<0.000000e+00> : vector<2x8x32xf32>
    %69 = tpu.matmul %15, %66, %cst_31 {dimension_numbers = #tpu.dot_dimension_numbers<[2], [1], [1], [2], [0, 0, 0, 1, 1, 2], [0], [0]>} : vector<2x8x6xbf16>, vector<2x6x32xbf16>, vector<2x8x32xf32> -> vector<2x8x32xf32>
    %cst_32 = arith.constant dense<0.000000e+00> : vector<2x8x32xf32>
    %70 = tpu.matmul %16, %68, %cst_32 {dimension_numbers = #tpu.dot_dimension_numbers<[2], [1], [1], [2], [0, 0, 0, 1, 1, 2], [0], [0]>} : vector<2x8x6xbf16>, vector<2x6x32xbf16>, vector<2x8x32xf32> -> vector<2x8x32xf32>
    "tpu.trace_stop"() : () -> ()
    %71 = arith.addf %69, %70 : vector<2x8x32xf32>
    %72 = arith.addf %71, %43 : vector<2x8x32xf32>
    %73 = math.tanh %72 : vector<2x8x32xf32>
    %74 = vector.shape_cast %73 : vector<2x8x32xf32> to vector<16x32xf32>
    %75 = arith.truncf %74 : vector<16x32xf32> to vector<16x32xbf16>
    "tpu.trace_start"() <{level = 10 : i32, message = "me,ef->mf"}> : () -> ()
    %cst_33 = arith.constant dense<0.000000e+00> : vector<16x32xf32>
    %76 = tpu.matmul %75, %32, %cst_33 {dimension_numbers = #tpu.dot_dimension_numbers<[1], [0], [0], [1], [0, 0, 1, 1], [], []>} : vector<16x32xbf16>, vector<32x32xbf16>, vector<16x32xf32> -> vector<16x32xf32>
    "tpu.trace_stop"() : () -> ()
    %77 = arith.addf %76, %21 : vector<16x32xf32>
    %78 = math.tanh %77 : vector<16x32xf32>
    %79 = arith.truncf %78 : vector<16x32xf32> to vector<16x32xbf16>
    "tpu.trace_start"() <{level = 10 : i32, message = "me,ef->mf"}> : () -> ()
    %cst_34 = arith.constant dense<0.000000e+00> : vector<16x96xf32>
    %80 = tpu.matmul %79, %27, %cst_34 {dimension_numbers = #tpu.dot_dimension_numbers<[1], [0], [0], [1], [0, 0, 1, 1], [], []>} : vector<16x32xbf16>, vector<32x96xbf16>, vector<16x96xf32> -> vector<16x96xf32>
    %cst_35 = arith.constant dense<0.000000e+00> : vector<16x64xf32>
    %81 = tpu.matmul %50, %30, %cst_35 {dimension_numbers = #tpu.dot_dimension_numbers<[1], [0], [0], [1], [0, 0, 1, 1], [], []>} : vector<16x32xbf16>, vector<32x64xbf16>, vector<16x64xf32> -> vector<16x64xf32>
    "tpu.trace_stop"() : () -> ()
    %82 = vector.extract_strided_slice %80 {offsets = [0, 0], sizes = [16, 64], strides = [1, 1]} : vector<16x96xf32> to vector<16x64xf32>
    %83 = arith.addf %82, %81 : vector<16x64xf32>
    %84 = arith.addf %83, %46 : vector<16x64xf32>
    %85 = arith.negf %84 : vector<16x64xf32>
    %86 = math.exp %85 : vector<16x64xf32>
    %cst_36 = arith.constant 1.000000e+00 : f32
    %87 = vector.broadcast %cst_36 : f32 to vector<16x64xf32>
    %88 = arith.addf %87, %86 : vector<16x64xf32>
    %89 = arith.divf %87, %88 : vector<16x64xf32>
    %90 = vector.extract_strided_slice %89 {offsets = [0, 0], sizes = [16, 32], strides = [1, 1]} : vector<16x64xf32> to vector<16x32xf32>
    %91 = vector.extract_strided_slice %89 {offsets = [0, 32], sizes = [16, 32], strides = [1, 1]} : vector<16x64xf32> to vector<16x32xf32>
    %92 = arith.mulf %91, %19 : vector<16x32xf32>
    %93 = arith.truncf %92 : vector<16x32xf32> to vector<16x32xbf16>
    "tpu.trace_start"() <{level = 10 : i32, message = "me,ef->mf"}> : () -> ()
    %cst_37 = arith.constant dense<0.000000e+00> : vector<16x32xf32>
    %94 = tpu.matmul %93, %34, %cst_37 {dimension_numbers = #tpu.dot_dimension_numbers<[1], [0], [0], [1], [0, 0, 1, 1], [], []>} : vector<16x32xbf16>, vector<32x32xbf16>, vector<16x32xf32> -> vector<16x32xf32>
    "tpu.trace_stop"() : () -> ()
    %95 = vector.extract_strided_slice %80 {offsets = [0, 64], sizes = [16, 32], strides = [1, 1]} : vector<16x96xf32> to vector<16x32xf32>
    %96 = arith.addf %95, %94 : vector<16x32xf32>
    %97 = arith.addf %96, %49 : vector<16x32xf32>
    %98 = math.tanh %97 : vector<16x32xf32>
    %cst_38 = arith.constant 1.000000e+00 : f32
    %99 = vector.broadcast %cst_38 : f32 to vector<16x32xf32>
    %100 = arith.subf %99, %90 : vector<16x32xf32>
    %101 = arith.mulf %100, %19 : vector<16x32xf32>
    %102 = arith.mulf %90, %98 : vector<16x32xf32>
    %103 = arith.addf %101, %102 : vector<16x32xf32>
    %104 = arith.truncf %103 : vector<16x32xf32> to vector<16x32xbf16>
    "tpu.trace_start"() <{level = 10 : i32, message = "me,ef->mf"}> : () -> ()
    %cst_39 = arith.constant dense<0.000000e+00> : vector<16x64xf32>
    %105 = tpu.matmul %104, %23, %cst_39 {dimension_numbers = #tpu.dot_dimension_numbers<[1], [0], [0], [1], [0, 0, 1, 1], [], []>} : vector<16x32xbf16>, vector<32x64xbf16>, vector<16x64xf32> -> vector<16x64xf32>
    "tpu.trace_stop"() : () -> ()
    %106 = vector.extract_strided_slice %105 {offsets = [0, 0], sizes = [16, 32], strides = [1, 1]} : vector<16x64xf32> to vector<16x32xf32>
    %107 = arith.truncf %106 : vector<16x32xf32> to vector<16x32xbf16>
    %108 = vector.shape_cast %107 : vector<16x32xbf16> to vector<2x8x32xbf16>
    %109 = vector.extract_strided_slice %105 {offsets = [0, 32], sizes = [16, 32], strides = [1, 1]} : vector<16x64xf32> to vector<16x32xf32>
    %110 = arith.truncf %109 : vector<16x32xf32> to vector<16x32xbf16>
    %111 = vector.shape_cast %110 : vector<16x32xbf16> to vector<2x8x32xbf16>
    "tpu.trace_start"() <{level = 10 : i32, message = "bcm,bme->bce"}> : () -> ()
    %cst_40 = arith.constant dense<0.000000e+00> : vector<2x6x32xf32>
    %112 = tpu.matmul %12, %108, %cst_40 {dimension_numbers = #tpu.dot_dimension_numbers<[2], [1], [1], [2], [0, 0, 0, 1, 1, 2], [0], [0]>} : vector<2x6x8xbf16>, vector<2x8x32xbf16>, vector<2x6x32xf32> -> vector<2x6x32xf32>
    %cst_41 = arith.constant dense<0.000000e+00> : vector<2x6x32xf32>
    %113 = tpu.matmul %14, %111, %cst_41 {dimension_numbers = #tpu.dot_dimension_numbers<[2], [1], [1], [2], [0, 0, 0, 1, 1, 2], [0], [0]>} : vector<2x6x8xbf16>, vector<2x8x32xbf16>, vector<2x6x32xf32> -> vector<2x6x32xf32>
    "tpu.trace_stop"() : () -> ()
    %114 = arith.addf %112, %113 : vector<2x6x32xf32>
    %115 = arith.addf %114, %39 : vector<2x6x32xf32>
    %116 = math.tanh %115 : vector<2x6x32xf32>
    %117 = arith.truncf %116 : vector<2x6x32xf32> to vector<2x6x32xbf16>
    "tpu.trace_start"() <{level = 10 : i32, message = "bce,ef->bcf"}> : () -> ()
    %cst_42 = arith.constant dense<0.000000e+00> : vector<2x6x64xf32>
    %118 = tpu.matmul %117, %25, %cst_42 {dimension_numbers = #tpu.dot_dimension_numbers<[2], [0], [0, 1], [1], [0, 0, 0, 1, 1, 1], [], []>} : vector<2x6x32xbf16>, vector<32x64xbf16>, vector<2x6x64xf32> -> vector<2x6x64xf32>
    "tpu.trace_stop"() : () -> ()
    %119 = vector.extract_strided_slice %118 {offsets = [0, 0, 0], sizes = [2, 6, 32], strides = [1, 1, 1]} : vector<2x6x64xf32> to vector<2x6x32xf32>
    %120 = arith.truncf %119 : vector<2x6x32xf32> to vector<2x6x32xbf16>
    %121 = vector.extract_strided_slice %118 {offsets = [0, 0, 32], sizes = [2, 6, 32], strides = [1, 1, 1]} : vector<2x6x64xf32> to vector<2x6x32xf32>
    %122 = arith.truncf %121 : vector<2x6x32xf32> to vector<2x6x32xbf16>
    "tpu.trace_start"() <{level = 10 : i32, message = "bmc,bce->bme"}> : () -> ()
    %cst_43 = arith.constant dense<0.000000e+00> : vector<2x8x32xf32>
    %123 = tpu.matmul %15, %120, %cst_43 {dimension_numbers = #tpu.dot_dimension_numbers<[2], [1], [1], [2], [0, 0, 0, 1, 1, 2], [0], [0]>} : vector<2x8x6xbf16>, vector<2x6x32xbf16>, vector<2x8x32xf32> -> vector<2x8x32xf32>
    %cst_44 = arith.constant dense<0.000000e+00> : vector<2x8x32xf32>
    %124 = tpu.matmul %16, %122, %cst_44 {dimension_numbers = #tpu.dot_dimension_numbers<[2], [1], [1], [2], [0, 0, 0, 1, 1, 2], [0], [0]>} : vector<2x8x6xbf16>, vector<2x6x32xbf16>, vector<2x8x32xf32> -> vector<2x8x32xf32>
    "tpu.trace_stop"() : () -> ()
    %125 = arith.addf %123, %124 : vector<2x8x32xf32>
    %126 = arith.addf %125, %43 : vector<2x8x32xf32>
    %127 = math.tanh %126 : vector<2x8x32xf32>
    %128 = vector.shape_cast %127 : vector<2x8x32xf32> to vector<16x32xf32>
    %129 = arith.truncf %128 : vector<16x32xf32> to vector<16x32xbf16>
    "tpu.trace_start"() <{level = 10 : i32, message = "me,ef->mf"}> : () -> ()
    %cst_45 = arith.constant dense<0.000000e+00> : vector<16x32xf32>
    %130 = tpu.matmul %129, %32, %cst_45 {dimension_numbers = #tpu.dot_dimension_numbers<[1], [0], [0], [1], [0, 0, 1, 1], [], []>} : vector<16x32xbf16>, vector<32x32xbf16>, vector<16x32xf32> -> vector<16x32xf32>
    "tpu.trace_stop"() : () -> ()
    %131 = arith.addf %130, %21 : vector<16x32xf32>
    %132 = math.tanh %131 : vector<16x32xf32>
    %133 = arith.truncf %132 : vector<16x32xf32> to vector<16x32xbf16>
    "tpu.trace_start"() <{level = 10 : i32, message = "me,ef->mf"}> : () -> ()
    %cst_46 = arith.constant dense<0.000000e+00> : vector<16x96xf32>
    %134 = tpu.matmul %133, %27, %cst_46 {dimension_numbers = #tpu.dot_dimension_numbers<[1], [0], [0], [1], [0, 0, 1, 1], [], []>} : vector<16x32xbf16>, vector<32x96xbf16>, vector<16x96xf32> -> vector<16x96xf32>
    %cst_47 = arith.constant dense<0.000000e+00> : vector<16x64xf32>
    %135 = tpu.matmul %104, %30, %cst_47 {dimension_numbers = #tpu.dot_dimension_numbers<[1], [0], [0], [1], [0, 0, 1, 1], [], []>} : vector<16x32xbf16>, vector<32x64xbf16>, vector<16x64xf32> -> vector<16x64xf32>
    "tpu.trace_stop"() : () -> ()
    %136 = vector.extract_strided_slice %134 {offsets = [0, 0], sizes = [16, 64], strides = [1, 1]} : vector<16x96xf32> to vector<16x64xf32>
    %137 = arith.addf %136, %135 : vector<16x64xf32>
    %138 = arith.addf %137, %46 : vector<16x64xf32>
    %139 = arith.negf %138 : vector<16x64xf32>
    %140 = math.exp %139 : vector<16x64xf32>
    %cst_48 = arith.constant 1.000000e+00 : f32
    %141 = vector.broadcast %cst_48 : f32 to vector<16x64xf32>
    %142 = arith.addf %141, %140 : vector<16x64xf32>
    %143 = arith.divf %141, %142 : vector<16x64xf32>
    %144 = vector.extract_strided_slice %143 {offsets = [0, 0], sizes = [16, 32], strides = [1, 1]} : vector<16x64xf32> to vector<16x32xf32>
    %145 = vector.extract_strided_slice %143 {offsets = [0, 32], sizes = [16, 32], strides = [1, 1]} : vector<16x64xf32> to vector<16x32xf32>
    %146 = arith.mulf %145, %103 : vector<16x32xf32>
    %147 = arith.truncf %146 : vector<16x32xf32> to vector<16x32xbf16>
    "tpu.trace_start"() <{level = 10 : i32, message = "me,ef->mf"}> : () -> ()
    %cst_49 = arith.constant dense<0.000000e+00> : vector<16x32xf32>
    %148 = tpu.matmul %147, %34, %cst_49 {dimension_numbers = #tpu.dot_dimension_numbers<[1], [0], [0], [1], [0, 0, 1, 1], [], []>} : vector<16x32xbf16>, vector<32x32xbf16>, vector<16x32xf32> -> vector<16x32xf32>
    "tpu.trace_stop"() : () -> ()
    %149 = vector.extract_strided_slice %134 {offsets = [0, 64], sizes = [16, 32], strides = [1, 1]} : vector<16x96xf32> to vector<16x32xf32>
    %150 = arith.addf %149, %148 : vector<16x32xf32>
    %151 = arith.addf %150, %49 : vector<16x32xf32>
    %152 = math.tanh %151 : vector<16x32xf32>
    %cst_50 = arith.constant 1.000000e+00 : f32
    %153 = vector.broadcast %cst_50 : f32 to vector<16x32xf32>
    %154 = arith.subf %153, %144 : vector<16x32xf32>
    %155 = arith.mulf %154, %103 : vector<16x32xf32>
    %156 = arith.mulf %144, %152 : vector<16x32xf32>
    %157 = arith.addf %155, %156 : vector<16x32xf32>
    %c0_51 = arith.constant 0 : index
    %158 = memref.load %arg1[%c0_51] : memref<2xi32, #tpu.memory_space<smem>>
    %159 = math.absi %158 : i32
    %c1_i32 = arith.constant 1 : i32
    %160 = arith.subi %159, %c1_i32 : i32
    %c0_i32 = arith.constant 0 : i32
    %161 = arith.addi %160, %c0_i32 : i32
    %162 = tpu.iota {dimensions = array<i32: 1>} : vector<1x16xi32>
    %163 = vector.broadcast %161 : i32 to vector<1x16xi32>
    %164 = arith.cmpi eq, %162, %163 : vector<1x16xi32>
    %165 = arith.extui %164 : vector<1x16xi1> to vector<1x16xi32>
    %166 = arith.sitofp %165 : vector<1x16xi32> to vector<1x16xf32>
    %c1_52 = arith.constant 1 : index
    %167 = memref.load %arg1[%c1_52] : memref<2xi32, #tpu.memory_space<smem>>
    %168 = math.absi %167 : i32
    %c1_i32_53 = arith.constant 1 : i32
    %169 = arith.subi %168, %c1_i32_53 : i32
    %c8_i32 = arith.constant 8 : i32
    %170 = arith.addi %169, %c8_i32 : i32
    %171 = tpu.iota {dimensions = array<i32: 1>} : vector<1x16xi32>
    %172 = vector.broadcast %170 : i32 to vector<1x16xi32>
    %173 = arith.cmpi eq, %171, %172 : vector<1x16xi32>
    %174 = arith.extui %173 : vector<1x16xi1> to vector<1x16xi32>
    %175 = arith.sitofp %174 : vector<1x16xi32> to vector<1x16xf32>
    %176 = tpu.concatenate %166, %175 in 0 : vector<1x16xf32>, vector<1x16xf32> -> vector<2x16xf32>
    %cst_54 = arith.constant dense<0.000000e+00> : vector<2x32xf32>
    %177 = tpu.matmul %176, %157, %cst_54 {dimension_numbers = #tpu.dot_dimension_numbers<[1], [0], [0], [1], [0, 0, 1, 1], [], []>} : vector<2x16xf32>, vector<16x32xf32>, vector<2x32xf32> -> vector<2x32xf32>
    %c0_55 = arith.constant 0 : index
    %c0_56 = arith.constant 0 : index
    %178 = vector.load %arg7[%c0_55, %c0_56] : memref<33x3xf32, #tpu.memory_space<vmem>>, vector<33x3xf32>
    %179 = vector.extract_strided_slice %178 {offsets = [0, 0], sizes = [32, 3], strides = [1, 1]} : vector<33x3xf32> to vector<32x3xf32>
    %cst_57 = arith.constant dense<0.000000e+00> : vector<2x3xf32>
    %180 = tpu.matmul %177, %179, %cst_57 {dimension_numbers = #tpu.dot_dimension_numbers<[1], [0], [0], [1], [0, 0, 1, 1], [], []>} : vector<2x32xf32>, vector<32x3xf32>, vector<2x3xf32> -> vector<2x3xf32>
    %181 = vector.extract_strided_slice %178 {offsets = [32, 0], sizes = [1, 3], strides = [1, 1]} : vector<33x3xf32> to vector<1x3xf32>
    %182 = vector.broadcast %181 : vector<1x3xf32> to vector<2x3xf32>
    %183 = arith.addf %180, %182 : vector<2x3xf32>
    %c0_58 = arith.constant 0 : index
    %c0_59 = arith.constant 0 : index
    %184 = vector.load %arg8[%c0_58, %c0_59] : memref<2x3xf32, #tpu.memory_space<vmem>>, vector<2x3xf32>
    tpu.vector_store %arg8[%c0_58, %c0_59], %183 {strides = array<i32>} : memref<2x3xf32, #tpu.memory_space<vmem>>, vector<2x3xf32>,
    return
  }
}

</mosaic_0001>

<bundles_post_ra>
// kernel: batch_eq_classifier.1
= control target key start
LH: loop header
LB: loop body
LE: loop exit
PB: predicated region body
PF: predicated region fallthrough
CT: control target
= control target key end

     0   :  { %13 = vsyncpa [#allocation5], 0  ;;  %s3297_s0 = inlined_call_operand.vmem [shape: f32[2,8,6], index: 0, kind: input, shape index: {}]   ;;  %s3298_s1 = inlined_call_operand.vmem [shape: s32[2], index: 1, kind: input, shape index: {}]   ;;  %s3299_s2 = inlined_call_operand.hbm [shape: f32[16,32], index: 2, kind: input, shape index: {}]   ;;  %s3300_s3 = inlined_call_operand.vmem [shape: bf16[2,32,64], index: 3, kind: input, shape index: {}]   ;;  %s3301_s4 = inlined_call_operand.vmem [shape: bf16[2,32,96], index: 4, kind: input, shape index: {}]   ;;  %s3302_s5 = inlined_call_operand.hbm [shape: bf16[2,32,32], index: 5, kind: input, shape index: {}]   ;;  %s3303_s6 = inlined_call_operand.vmem [shape: f32[3,96], index: 6, kind: input, shape index: {}]   ;;  %s3304_s7 = inlined_call_operand.vmem [shape: f32[33,3], index: 7, kind: input, shape index: {}]   ;;  %s3305_s8 = inlined_call_operand.hbm [shape: f32[2,3], index: 8, kind: output, shape index: {}]  }
   0x1   :  { %14 = vsyncpa [#allocation3], 0 }
   0x2   :  { %15 = vsyncpa [#allocation8], 0 }
   0x3   :  { %16 = vsyncpa [#allocation4], 0  ;;  %s25_s29 = sshll.u32 %s3298_s1, 4  ;;  %s26_s29 = int_to_ptr.vmem [resolvable:$true] %s25_s29 }
   0x4   :  { %s2687_s30 = scalar_lea.vmem %s26_s29, 16  ;;  %p2692_p1 = scmp.lt.s32.totalorder %s26_s29, %s26_s29 }
   0x5   :  { %p2688_p0 = scmp.ne.s32.totalorder %s26_s29, %s2687_s30  ;;  %p2693_p2 = scmp.lt.s32.totalorder %s2687_s30, %s2687_s30 }
   0x7   :  { %p2694_p3 = por %p2693_p2, %p2692_p1 }
   0x9   :  { %p2695_p4 = pnand %p2694_p3, %p2688_p0 }
   0xb   :  { %2698 = shalt.err (!%p2695_p4)
}
   0xc   :  { %s2773_s9 = smov [#allocation2]   ;;  %s2774_s10 = smov [#allocation6]  }
   0xd   :  { %28 = dma.vmem_to_smem %s26_s29, 16, %s2773_s9, [#allocation5]  }
   0xe   :  { %s34_s11 = sshll.u32 %s2774_s10, 4  ;;  %s2699_s14 = scalar_lea.hbm %s3299_s2, 256  ;;  %s35_s11 = int_to_ptr.vmem [resolvable:$true] %s34_s11 }
   0xf   :  { %p2700_p5 = scmp.ne.s32.totalorder %s3299_s2, %s2699_s14  ;;  %p2703_p6 = scmp.lt.u32.totalorder %s2699_s14, %s3299_s2 }
  0x11   :  { %p2705_p7 = pnand %p2703_p6, %p2700_p5 }
  0x13   :  { %2708 = shalt.err (!%p2705_p7)
}
  0x14   :  { %s2709_s18 = scalar_lea.vmem %s35_s11, 256  ;;  %p2714_p9 = scmp.lt.s32.totalorder %s35_s11, %s35_s11 }
  0x15   :  { %p2710_p8 = scmp.ne.s32.totalorder %s35_s11, %s2709_s18  ;;  %p2715_p10 = scmp.lt.s32.totalorder %s2709_s18, %s2709_s18 }
  0x17   :  { %p2716_p11 = por %p2715_p10, %p2714_p9 }
  0x19   :  { %p2717_p12 = pnand %p2716_p11, %p2710_p8 }
  0x1b   :  { %2720 = shalt.err (!%p2717_p12)
}
  0x1c   :  { %s2775_s19 = smov 128   ;;  %s2776_s20 = smov 8  }
  0x1d   :  { %40 = dma.hbm_to_vmem [thread:$0]  %s3299_s2, 256, %s35_s11, [#allocation3], %s2775_s19, %s2775_s19, %s2776_s20  }
  0x1e   :  { %s2777_s23 = smov [#allocation7]   ;;  %s2721_s27 = scalar_lea.hbm %s3302_s5, 512 }
  0x1f   :  { %s50_s24 = sshll.u32 %s2777_s23, 4  ;;  %p2722_p13 = scmp.ne.s32.totalorder %s3302_s5, %s2721_s27  ;;  %s51_s24 = int_to_ptr.vmem [resolvable:$true] %s50_s24 }
  0x20   :  { %p2725_p0 = scmp.lt.u32.totalorder %s2721_s27, %s3302_s5 }
  0x22   :  { %p2727_p1 = pnand %p2725_p0, %p2722_p13 }
  0x24   :  { %2730 = shalt.err (!%p2727_p1)
}
  0x25   :  { %s2731_s10 = scalar_lea.vmem %s51_s24, 512  ;;  %p2736_p3 = scmp.lt.s32.totalorder %s51_s24, %s51_s24 }
  0x26   :  { %p2732_p2 = scmp.ne.s32.totalorder %s51_s24, %s2731_s10  ;;  %p2737_p4 = scmp.lt.s32.totalorder %s2731_s10, %s2731_s10 }
  0x28   :  { %p2738_p5 = por %p2737_p4, %p2736_p3 }
  0x2a   :  { %p2739_p6 = pnand %p2738_p5, %p2732_p2 }
  0x2c   :  { %2742 = shalt.err (!%p2739_p6)
}
  0x2d   :  { %s2778_s2 = smov 64   ;;  %s2779_s11 = smov 4  }
  0x2e   :  { %56 = dma.hbm_to_vmem [thread:$0]  %s3302_s5, 512, %s51_s24, [#allocation8], %s2778_s2, %s2778_s2, %s2779_s11  }
  0x2f   :  { %2765 = dma.done.wait [#allocation5], 16  }
  0x30   :  { %2766 = vsyncadd [#allocation5], 4294967280 }
  0x31   :  { %2767 = dma.done.wait [#allocation3], 256  }
  0x32   :  { %2768 = vsyncadd [#allocation3], 4294967040 }
  0x33   :  { %2769 = dma.done.wait [#allocation8], 512  }
  0x34   :  { %2770 = vsyncadd [#allocation8], 4294966784 }
  0x35   :  { %70 = sfence }
  0x36   :  { %v2865_v0 = vld [vmem:[%s3300_s3] sm:$0xff]   ;;  %v2780_v1 = vmov 0.0   ;;  %v2871_v2 = vld [vmem:[%s3300_s3 + $0x8] sm:$0xff]   ;;  %vm2781_vm0 = vmmov 0   ;;  %vm275_vm1 = vcmask 261120   ;;  %vm332_vm2 = vcmask 1043456  }
  0x37   :  { %2393 = vmatprep.subr.bf16.mxu0 %v2780_v1  ;;  %2401 = vmatprep.subr.bf16.mxu1 %v2780_v1  ;;  %v2877_v3 = vld [vmem:[#allocation6] sm:$0xff]  ;;  %v73_v5 = vld [vmem:[%s3297_s0 + $0x8] sm:$0xff]  ;;  %vm328_vm3 = vcmask 64512   ;;  %v2947_v37 = vld [vmem:[%s3300_s3 + $0x10] sm:$0xff]   ;;  %v250_v51 = vlaneseq  ;;  %v2783_v58 = vmov 1966171168  }
  0x38   :  { %2394 = vmatpush3.bf16.msra.mxu0 %v2865_v0  ;;  %2397 = vmatprep.mubr.msk.bf16.mxu0 %vm2781_vm0, %v2780_v1  ;;  %v72_v4 = vld [vmem:[%s3297_s0] sm:$0xff]  ;;  %v79_v7 = vmax.f32 %v73_v5, -1.0  ;;  %v2890_v8 = vpack.c.bf16 %v2877_v3, %v2877_v3  ;;  %v75_v13 = vmax.f32 %v73_v5, 0.0  ;;  %s2782_s0 = smov 96   ;;  %v2953_v38 = vld [vmem:[%s3300_s3 + $0x18] sm:$0xff]   ;;  %v525_v59 = vunpack.c.l.s4 %v2783_v58  ;;  %s2053_s5 = sld [smem:[#allocation2]] }
  0x39   :  { %2395 = vmatprep.subr.bf16.mxu0 %v2780_v1  ;;  %v78_v6 = vmax.f32 %v72_v4, -1.0  ;;  %2403 = vmatprep.mubr.msk.bf16.mxu1 %vm2781_vm0, %v2780_v1  ;;  %v74_v22 = vmax.f32 %v72_v4, 0.0  ;;  %v2959_v53 = vshrl.u32 %v250_v51, 7  ;;  %v2965_v55 = vld [vmem:[%s3303_s6] sm:$0x7]  ;;  %vm736_vm4 = vcmask 1042432  }
  0x3a   :  { %v81_v10 = vmin.f32 %v79_v7, 0.0  ;;  %v2904_v14 = vmin.f32 %v75_v13, 1.0  ;;  %v526_v63 = vunpack.c.0.s8 %v525_v59  ;;  %vm732_vm5 = vcmask 48128   ;;  %s2308_s17 = sld [smem:[#allocation2 + $0x1]]  ;;  %s2787_s6 = smov [#allocation9]  }
  0x3b   :  { %v80_v9 = vmin.f32 %v78_v6, 0.0  ;;  %v2911_v23 = vmin.f32 %v74_v22, 1.0  ;;  %v252_v54 = vsub.s32 0, %v2959_v53  ;;  %vm2073_vm8 = vcmask 1040384   ;;  %s2239_s25 = sshll.u32 %s2787_s6, 4  ;;  %s2240_s25 = int_to_ptr.vmem [resolvable:$true] %s2239_s25 }
  0x3c   :  { %2396 = vmatpush3.bf16.msra.mxu0 %v2871_v2  ;;  %v2899_v12 = vsub.f32 0.0, %v81_v10  ;;  %v2973_v10 = vsub.s32 %v526_v63, %v2959_v53  ;;  %vm2075_vm9 = vcmask 130048   ;;  %vm2231_vm10 = vcmask 17408   ;;  %s2743_s26 = scalar_lea.vmem %s2240_s25, 32  ;;  %p2748_p8 = scmp.lt.s32.totalorder %s2240_s25, %s2240_s25 }
  0x3d   :  { %v2893_v11 = vsub.f32 0.0, %v80_v9  ;;  %2413 = vmatprep.subr.bf16.mxu0 %v2780_v1  ;;  %v2968_v56 = vrot.slane %v2965_v55, %v252_v54  ;;  %p2744_p7 = scmp.ne.s32.totalorder %s2240_s25, %s2743_s26  ;;  %p2749_p9 = scmp.lt.s32.totalorder %s2743_s26, %s2743_s26 }
  0x3e   :  { %s2054_s18 = sshra.s32 %s2053_s5, 31 }
  0x3f   :  { %2398 = vmatmul.mubr.msk.bf16.vlgmr.msra.gmra.mrb[0].mxu0 %vm275_vm1, %v2890_v8  ;;  %150 = vxpose.xlu1.b32.start.end [1/1] (short) (narrow) %v2893_v11, 8  ;;  %p2750_p10 = por %p2749_p9, %p2748_p8 }
  0x40   :  { %2415 = vmatprep.mubr.msk.bf16.mxu0 %vm2781_vm0, %v2780_v1  ;;  %s2065_s19 = sshra.s32 %s2308_s17, 31 }
  0x41   :  { %s2066_s20 = sadd.s32 %s2308_s17, %s2065_s19  ;;  %p2751_p11 = pnand %p2750_p10, %p2744_p7 }
  0x42   :  { %s2067_s22 = sxor.u32 %s2066_s20, %s2065_s19 }
  0x43   :  { %182 = vxpose.xlu1.b32.start.end [1/1] (short) (narrow) %v2899_v12, 8  ;;  %s2068_s3 = sadd.s32 7, %s2067_s22 }
  0x47   :  { %116 = vxpose.xlu1.b32.start.end [1/1] (short) (narrow) %v2904_v14, 8 }
  0xbf   :  { %v166_v24 = vpop.trf.xlu1 }
  0xc0   :  { %v2915_v27 = vpack.c.bf16 %v166_v24, %v166_v24 }
  0xc3   :  { %v198_v30 = vpop.trf.xlu1 }
  0xc4   :  { %v2924_v31 = vpack.c.bf16 %v198_v30, %v198_v30 }
  0xc7   :  { %v132_v33 = vpop.trf.xlu1 }
  0xc8   :  { %v2932_v34 = vpack.c.bf16 %v132_v33, %v132_v33 }
 0x112   :  { %v313_v15 = vpop.f32.mrb[0].mxu0 }
 0x113   :  { %v2313_v16 = vpack.c.bf16 %v313_v15, %v313_v15  ;;  %v2399_v17 = vpop.f32.mrb[1].mxu0 }
 0x114   :  { %v316_v18 = vpop.f32.mrb[2].mxu0 }
 0x115   :  { %v428_v19 = vsel %vm332_vm2, %v2313_v16, 0  ;;  %326 = vrot.lane.b32.xlu0 %v2313_v16, %s2782_s0  ;;  %v2400_v20 = vpop.f32.mrb[3].mxu0  ;;  %v2314_v21 = vpack.c.bf16 %v316_v18, %v316_v18 }
 0x116   :  { %2414 = vmatpush3.bf16.msra.mxu0 %v428_v19 }
 0x117   :  { %2425 = vmatprep.subr.bf16.mxu0 %v2780_v1  ;;  %v474_v32 = vsel %vm332_vm2, %v2314_v21, 0 }
 0x119   :  { %376 = vrot.lane.b32.xlu0 %v2314_v21, %s2782_s0 }
 0x137   :  { %84 = vxpose.xlu0.b32.start.end [1/1] (short) (narrow) %v2911_v23, 8 }
 0x187   :  { %v327_v25 = vpop.permute.xlu0 %326 }
 0x188   :  { %v334_v26 = vsel %vm332_vm2, %v327_v25, 0 }
 0x189   :  { %2402 = vmatpush3.bf16.msra.mxu1 %v334_v26 }
 0x18a   :  { %2407 = vmatprep.subr.bf16.mxu1 %v2780_v1 }
 0x18b   :  { %v377_v28 = vpop.permute.xlu0 %376 }
 0x18c   :  { %v382_v29 = vsel %vm332_vm2, %v377_v28, 0  ;;  %2404 = vmatmul.mubr.msk.bf16.vlgmr.msra.gmra.mrb[0].mxu1 %vm328_vm3, %v2915_v27 }
 0x18d   :  { %2408 = vmatpush3.bf16.msra.mxu1 %v382_v29  ;;  %2409 = vmatprep.mubr.msk.bf16.mxu1 %vm2781_vm0, %v2780_v1 }
 0x18e   :  { %2419 = vmatprep.subr.bf16.mxu1 %v2780_v1 }
 0x194   :  { %2410 = vmatmul.mubr.msk.bf16.vlgmr.msra.gmra.mrb[4].mxu1 %vm328_vm3, %v2924_v31 }
 0x195   :  { %2420 = vmatpush3.bf16.msra.mxu1 %v474_v32  ;;  %2421 = vmatprep.mubr.msk.bf16.mxu1 %vm2781_vm0, %v2780_v1 }
 0x196   :  { %2433 = vmatprep.subr.bf16.mxu1 %v2780_v1 }
 0x19c   :  { %2422 = vmatmul.mubr.msk.bf16.vlgmr.msra.gmra.mrb[8].mxu1 %vm328_vm3, %v2932_v34 }
 0x19d   :  { %2435 = vmatprep.mubr.msk.bf16.mxu1 %vm2781_vm0, %v2780_v1 }
 0x1b7   :  { %v100_v35 = vpop.trf.xlu0 }
 0x1b8   :  { %v2938_v36 = vpack.c.bf16 %v100_v35, %v100_v35 }
 0x1ba   :  { %2416 = vmatmul.mubr.msk.bf16.vlgmr.msra.gmra.mrb[4].mxu0 %vm328_vm3, %v2938_v36 }
 0x1bb   :  { %2429 = vmatprep.mubr.msk.bf16.mxu0 %vm2781_vm0, %v2780_v1  ;;  %2426 = vmatpush3.bf16.msra.mxu0 %v2947_v37 }
 0x1bc   :  { %2427 = vmatprep.subr.bf16.mxu0 %v2780_v1 }
 0x1bf   :  { %2428 = vmatpush3.bf16.msra.mxu0 %v2953_v38 }
 0x1c0   :  { %2439 = vmatprep.subr.bf16.mxu0 %v2780_v1 }
 0x25f   :  { %v370_v39 = vpop.f32.mrb[0].mxu1 }
 0x260   :  { %v2405_v40 = vpop.f32.mrb[1].mxu1 }
 0x261   :  { %v373_v41 = vpop.f32.mrb[2].mxu1 }
 0x262   :  { %v2406_v42 = vpop.f32.mrb[3].mxu1 }
 0x267   :  { %v418_v43 = vpop.f32.mrb[4].mxu1 }
 0x268   :  { %v2411_v44 = vpop.f32.mrb[5].mxu1 }
 0x269   :  { %v421_v45 = vpop.f32.mrb[6].mxu1 }
 0x26a   :  { %v2412_v46 = vpop.f32.mrb[7].mxu1 }
 0x26f   :  { %v510_v47 = vpop.f32.mrb[8].mxu1 }
 0x270   :  { %v511_v48 = vadd.f32 %v510_v47, %v418_v43  ;;  %v2423_v49 = vpop.f32.mrb[9].mxu1  ;;  %v2784_v43 = vmov 1983009808  }
 0x271   :  { %v513_v50 = vpop.f32.mrb[10].mxu1  ;;  %v670_v44 = vunpack.c.l.s4 %v2784_v43 }
 0x272   :  { %v2424_v52 = vpop.f32.mrb[11].mxu1  ;;  %v517_v57 = vadd.f32 %v511_v48, %v2968_v56 }
 0x273   :  { %v671_v45 = vunpack.c.0.s8 %v670_v44 }
 0x274   :  { %2639 = vtanh.f32 %v517_v57 }
 0x275   :  { %v2990_v46 = vsub.s32 %v671_v45, %v2959_v53 }
 0x27e   :  { %v2640_v5 = vpop.eup %2639 }
 0x27f   :  { %v521_v9 = vpack.c.bf16 %v2640_v5, %v2640_v5 }
 0x281   :  { %v553_v13 = vrot.slane %v521_v9, %v2973_v10 }
 0x283   :  { %v554_v15 = vcombine.high %v553_v13, %v553_v13  ;;  %v561_v16 = vrot.slane %v553_v13, %v2973_v10 }
 0x285   :  { %v568_v19 = vrot.slane %v554_v15, %v2973_v10  ;;  %v569_v20 = vcombine.high %v561_v16, %v561_v16 }
 0x287   :  { %v572_v25 = vcombine.low %v568_v19, %v569_v20 }
 0x289   :  { %v593_v32 = vrot.slane %v572_v25, %v2973_v10  ;;  %v3031_v25 = vpack.c.bf16 %v2904_v14, %v2904_v14 }
 0x28b   :  { %v608_v41 = vrot.slane %v593_v32, %v2973_v10 }
 0x28d   :  { %v464_v60 = vpop.f32.mrb[4].mxu0 }
 0x28e   :  { %v465_v61 = vadd.f32 %v464_v60, %v370_v39  ;;  %v2417_v62 = vpop.f32.mrb[5].mxu0 }
 0x28f   :  { %v467_v4 = vpop.f32.mrb[6].mxu0 }
 0x290   :  { %v516_v6 = vadd.f32 %v465_v61, %v2968_v56  ;;  %v2418_v7 = vpop.f32.mrb[7].mxu0 }
 0x292   :  { %2641 = vtanh.f32 %v516_v6 }
 0x29c   :  { %v2642_v17 = vpop.eup %2641 }
 0x29d   :  { %v520_v18 = vpack.c.bf16 %v2642_v17, %v2642_v17 }
 0x29f   :  { %v530_v21 = vrot.slane %v520_v18, %v2973_v10  ;;  %v3003_v18 = vpack.c.bf16 %v2893_v11, %v2893_v11 }
 0x2a1   :  { %v531_v22 = vcombine.high %v530_v21, %v530_v21  ;;  %v538_v24 = vrot.slane %v530_v21, %v2973_v10  ;;  %v3008_v21 = vpack.c.bf16 %v2899_v12, %v2899_v12 }
 0x2a3   :  { %v545_v26 = vrot.slane %v531_v22, %v2973_v10  ;;  %v546_v28 = vcombine.high %v538_v24, %v538_v24 }
 0x2a5   :  { %v570_v29 = vcombine.low %v538_v24, %v545_v26  ;;  %v571_v30 = vcombine.low %v546_v28, %v561_v16  ;;  %v3026_v24 = vpack.c.bf16 %v2911_v23, %v2911_v23  ;;  %v3041_v23 = vld [vmem:[#allocation7] sm:$0xff]   ;;  %v3044_v26 = vld [vmem:[#allocation7 + $0x8] sm:$0xff]  }
 0x2a7   :  { %v579_v33 = vrot.slane %v570_v29, %v2973_v10  ;;  %v586_v35 = vrot.slane %v571_v30, %v2973_v10 }
 0x2a9   :  { %v594_v39 = vcombine.low %v579_v33, %v586_v35  ;;  %v256_v35 = vsub.s32 1, %v2959_v53 }
 0x2ab   :  { %v601_v40 = vrot.slane %v594_v39, %v2973_v10 }
 0x2ad   :  { %v609_v42 = vcombine.low %v601_v40, %v608_v41  ;;  %v3051_v41 = vrot.slane %v2965_v55, %v256_v35 }
 0x2af   :  { %2430 = vmatmul.mubr.msk.bf16.vlgmr.msra.gmra.mrb[8].mxu0 %vm275_vm1, %v609_v42 }
 0x2b0   :  { %2441 = vmatprep.mubr.msk.bf16.mxu0 %vm2781_vm0, %v2780_v1 }
 0x382   :  { %v659_v47 = vpop.f32.mrb[8].mxu0 }
 0x383   :  { %v668_v48 = vcombine.high %v659_v47, %v659_v47  ;;  %v675_v49 = vrot.slane %v659_v47, %v2990_v46  ;;  %v2431_v50 = vpop.f32.mrb[9].mxu0 }
 0x384   :  { %v662_v52 = vpop.f32.mrb[10].mxu0 }
 0x385   :  { %v682_v54 = vrot.slane %v668_v48, %v2990_v46  ;;  %v683_v57 = vcombine.high %v675_v49, %v675_v49  ;;  %v691_v58 = vrot.slane %v662_v52, %v2990_v46  ;;  %v2432_v59 = vpop.f32.mrb[11].mxu0 }
 0x387   :  { %v693_v60 = vcombine.low %v675_v49, %v683_v57  ;;  %v684_v61 = vcombine.high %v682_v54, %v682_v54  ;;  %v692_v62 = vcombine.high %v691_v58, %v691_v58  ;;  %v707_v4 = vrot.slane %v682_v54, %v2990_v46 }
 0x389   :  { %v700_v63 = vrot.slane %v693_v60, %v2990_v46  ;;  %v709_v5 = vcombine.low %v684_v61, %v691_v58  ;;  %v723_v7 = vrot.slane %v692_v62, %v2990_v46  ;;  %v3061_v62 = vld [vmem:[%s3301_s4 + $0x10] sm:$0xff]  }
 0x38b   :  { %v716_v6 = vrot.slane %v709_v5, %v2990_v46  ;;  %v708_v9 = vcombine.low %v700_v63, %v707_v4  ;;  %v3066_v63 = vld [vmem:[%s3301_s4] sm:$0xff]   ;;  %v3073_v4 = vld [vmem:[%s3301_s4 + $0x18] sm:$0xff]   ;;  %v3078_v5 = vld [vmem:[%s3301_s4 + $0x8] sm:$0xff]   ;;  %s2785_s4 = smov 32  }
 0x38d   :  { %v727_v13 = vpack.c.bf16 %v708_v9, %v708_v9  ;;  %v724_v15 = vcombine.low %v716_v6, %v723_v7  ;;  %v3096_v6 = vld [vmem:[#allocation6 + $0x8] sm:$0xff] }
 0x38f   :  { %730 = vrot.lane.b32.xlu1 %v727_v13, %s2782_s0  ;;  %v728_v16 = vpack.c.bf16 %v724_v15, %v724_v15  ;;  %v833_v11 = vsel %vm736_vm4, %v727_v13, 0 }
 0x391   :  { %781 = vrot.lane.b32.xlu0 %v728_v16, %s2782_s0  ;;  %v879_v12 = vsel %vm736_vm4, %v728_v16, 0 }
 0x393   :  { %1111 = vrot.lane.b32.xlu1 %v2877_v3, %s2785_s4 }
 0x401   :  { %v731_v17 = vpop.permute.xlu1 %730 }
 0x402   :  { %v738_v19 = vsel %vm736_vm4, %v731_v17, 0 }
 0x403   :  { %2434 = vmatpush3.bf16.msra.mxu1 %v738_v19  ;;  %v782_v20 = vpop.permute.xlu0 %781 }
 0x404   :  { %v787_v22 = vsel %vm736_vm4, %v782_v20, 0  ;;  %2445 = vmatprep.subr.bf16.mxu1 %v2780_v1 }
 0x405   :  { %2440 = vmatpush3.bf16.msra.mxu0 %v787_v22 }
 0x406   :  { %2436 = vmatmul.mubr.msk.bf16.vlgmr.msra.gmra.mrb[12].mxu1 %vm732_vm5, %v3003_v18  ;;  %2451 = vmatprep.subr.bf16.mxu0 %v2780_v1 }
 0x407   :  { %2446 = vmatpush3.bf16.msra.mxu1 %v833_v11  ;;  %2447 = vmatprep.mubr.msk.bf16.mxu1 %vm2781_vm0, %v2780_v1 }
 0x408   :  { %2442 = vmatmul.mubr.msk.bf16.vlgmr.msra.gmra.mrb[12].mxu0 %vm732_vm5, %v3008_v21  ;;  %2457 = vmatprep.subr.bf16.mxu1 %v2780_v1 }
 0x409   :  { %2452 = vmatpush3.bf16.msra.mxu0 %v879_v12  ;;  %2453 = vmatprep.mubr.msk.bf16.mxu0 %vm2781_vm0, %v2780_v1  ;;  %v3103_v12 = vld [vmem:[#allocation7 + $0x10] sm:$0xff]  }
 0x40a   :  { %2465 = vmatprep.subr.bf16.mxu0 %v2780_v1 }
 0x40e   :  { %2448 = vmatmul.mubr.msk.bf16.vlgmr.msra.gmra.mrb[16].mxu1 %vm732_vm5, %v3026_v24 }
 0x40f   :  { %2461 = vmatprep.mubr.msk.bf16.mxu1 %vm2781_vm0, %v2780_v1  ;;  %2458 = vmatpush3.bf16.msra.mxu1 %v3041_v23 }
 0x410   :  { %2454 = vmatmul.mubr.msk.bf16.vlgmr.msra.gmra.mrb[16].mxu0 %vm732_vm5, %v3031_v25  ;;  %2459 = vmatprep.subr.bf16.mxu1 %v2780_v1 }
 0x411   :  { %2469 = vmatprep.mubr.msk.bf16.mxu0 %vm2781_vm0, %v2780_v1  ;;  %2466 = vmatpush3.bf16.msra.mxu0 %v3066_v63 }
 0x412   :  { %2467 = vmatprep.subr.bf16.mxu0 %v2780_v1 }
 0x413   :  { %2460 = vmatpush3.bf16.msra.mxu1 %v3044_v26 }
 0x414   :  { %2473 = vmatprep.subr.bf16.mxu1 %v2780_v1 }
 0x415   :  { %2468 = vmatpush3.bf16.msra.mxu0 %v3078_v5 }
 0x416   :  { %2481 = vmatprep.subr.bf16.mxu0 %v2780_v1 }
 0x4d9   :  { %v774_v14 = vpop.f32.mrb[12].mxu1 }
 0x4da   :  { %v2437_v28 = vpop.f32.mrb[13].mxu1 }
 0x4db   :  { %v777_v29 = vpop.f32.mrb[14].mxu1  ;;  %v823_v30 = vpop.f32.mrb[12].mxu0  ;;  %v260_v28 = vsub.s32 2, %v2959_v53 }
 0x4dc   :  { %v2438_v32 = vpop.f32.mrb[15].mxu1  ;;  %v2443_v33 = vpop.f32.mrb[13].mxu0 }
 0x4dd   :  { %v826_v39 = vpop.f32.mrb[14].mxu0  ;;  %v3113_v29 = vrot.slane %v2965_v55, %v260_v28 }
 0x4de   :  { %v2444_v40 = vpop.f32.mrb[15].mxu0 }
 0x4e1   :  { %v869_v42 = vpop.f32.mrb[16].mxu1 }
 0x4e2   :  { %v870_v43 = vadd.f32 %v869_v42, %v774_v14  ;;  %v2449_v44 = vpop.f32.mrb[17].mxu1  ;;  %v3106_v14 = vld [vmem:[#allocation7 + $0x18] sm:$0xff]  }
 0x4e3   :  { %v872_v45 = vpop.f32.mrb[18].mxu1  ;;  %v915_v47 = vpop.f32.mrb[16].mxu0 }
 0x4e4   :  { %v921_v48 = vadd.f32 %v870_v43, %v3051_v41  ;;  %v916_v49 = vadd.f32 %v915_v47, %v823_v30  ;;  %v2450_v50 = vpop.f32.mrb[19].mxu1  ;;  %v2455_v52 = vpop.f32.mrb[17].mxu0 }
 0x4e5   :  { %v918_v54 = vpop.f32.mrb[18].mxu0  ;;  %v1112_v50 = vpop.permute.xlu1 %1111 }
 0x4e6   :  { %v922_v57 = vadd.f32 %v916_v49, %v3051_v41  ;;  %v2456_v58 = vpop.f32.mrb[19].mxu0  ;;  %2643 = vtanh.f32 %v921_v48 }
 0x4e8   :  { %2645 = vtanh.f32 %v922_v57 }
 0x4f0   :  { %v2644_v59 = vpop.eup %2643 }
 0x4f2   :  { %v2646_v60 = vpop.eup %2645 }
 0x4f3   :  { %v925_v61 = vpack.c.bf16 %v2646_v60, %v2644_v59 }
 0x4f5   :  { %2462 = vmatmul.mubr.msk.bf16.vlgmr.msra.gmra.mrb[20].mxu1 %vm275_vm1, %v925_v61 }
 0x4f6   :  { %2477 = vmatprep.mubr.msk.bf16.mxu1 %vm2781_vm0, %v2780_v1  ;;  %2474 = vmatpush3.bf16.msra.mxu1 %v3061_v62 }
 0x4f7   :  { %2475 = vmatprep.subr.bf16.mxu1 %v2780_v1 }
 0x4fa   :  { %2476 = vmatpush3.bf16.msra.mxu1 %v3073_v4 }
 0x4fb   :  { %2489 = vmatprep.subr.bf16.mxu1 %v2780_v1 }
 0x4fd   :  { %2478 = vmatmul.mubr.msk.bf16.vlgmr.msra.gmra.mrb[24].mxu1 %vm275_vm1, %v2890_v8 }
 0x4fe   :  { %2490 = vmatpush3.bf16.msra.mxu1 %v2865_v0  ;;  %2493 = vmatprep.mubr.msk.bf16.mxu1 %vm2781_vm0, %v2780_v1 }
 0x4ff   :  { %2491 = vmatprep.subr.bf16.mxu1 %v2780_v1 }
 0x502   :  { %2492 = vmatpush3.bf16.msra.mxu1 %v2871_v2 }
 0x503   :  { %2503 = vmatprep.subr.bf16.mxu1 %v2780_v1 }
 0x5c8   :  { %v975_v7 = vpop.f32.mrb[20].mxu1 }
 0x5c9   :  { %v976_v8 = vadd.f32 %v975_v7, %v3096_v6  ;;  %v2463_v9 = vpop.f32.mrb[21].mxu1 }
 0x5ca   :  { %v978_v0 = vpop.f32.mrb[22].mxu1 }
 0x5cb   :  { %v979_v13 = vadd.f32 %v978_v0, %v3096_v6  ;;  %v2464_v15 = vpop.f32.mrb[23].mxu1  ;;  %2647 = vtanh.f32 %v976_v8 }
 0x5cd   :  { %2649 = vtanh.f32 %v979_v13 }
 0x5d0   :  { %v1087_v2 = vpop.f32.mrb[24].mxu1 }
 0x5d1   :  { %v2479_v20 = vpop.f32.mrb[25].mxu1 }
 0x5d2   :  { %v1090_v22 = vpop.f32.mrb[26].mxu1 }
 0x5d3   :  { %v2480_v11 = vpop.f32.mrb[27].mxu1 }
 0x5d5   :  { %v2648_v16 = vpop.eup %2647 }
 0x5d7   :  { %v2650_v17 = vpop.eup %2649 }
 0x5d8   :  { %v984_v19 = vpack.c.bf16 %v2650_v17, %v2648_v16 }
 0x5da   :  { %2470 = vmatmul.mubr.msk.bf16.vlgmr.msra.gmra.mrb[20].mxu0 %vm275_vm1, %v984_v19 }
 0x5db   :  { %2485 = vmatprep.mubr.msk.bf16.mxu0 %vm2781_vm0, %v2780_v1  ;;  %2482 = vmatpush3.bf16.msra.mxu0 %v3103_v12 }
 0x5dc   :  { %2483 = vmatprep.subr.bf16.mxu0 %v2780_v1 }
 0x5df   :  { %2484 = vmatpush3.bf16.msra.mxu0 %v3106_v14 }
 0x5e0   :  { %2497 = vmatprep.subr.bf16.mxu0 %v2780_v1 }
 0x6ad   :  { %v1034_v30 = vpop.f32.mrb[20].mxu0 }
 0x6ae   :  { %v1094_v32 = vadd.f32 %v1087_v2, %v1034_v30  ;;  %v2471_v33 = vpop.f32.mrb[21].mxu0 }
 0x6af   :  { %v1037_v35 = vpop.f32.mrb[22].mxu0 }
 0x6b0   :  { %v1096_v39 = vadd.f32 %v1094_v32, %v3113_v29  ;;  %v1095_v40 = vadd.f32 %v1090_v22, %v1037_v35  ;;  %v2472_v42 = vpop.f32.mrb[23].mxu0 }
 0x6b2   :  { %v2283_v43 = vmul.f32 -1.442695, %v1096_v39  ;;  %v1097_v44 = vadd.f32 %v1095_v40, %v3113_v29 }
 0x6b4   :  { %2651 = vpow2.f32 %v2283_v43  ;;  %v2284_v45 = vmul.f32 -1.442695, %v1097_v44 }
 0x6b6   :  { %2653 = vpow2.f32 %v2284_v45 }
 0x6be   :  { %v2652_v47 = vpop.eup %2651 }
 0x6bf   :  { %v1104_v48 = vadd.f32 1.0, %v2652_v47 }
 0x6c0   :  { %v2654_v53 = vpop.eup %2653 }
 0x6c1   :  { %2655 = vrcp.f32 %v1104_v48  ;;  %v1105_v55 = vadd.f32 1.0, %v2654_v53 }
 0x6c3   :  { %2657 = vrcp.f32 %v1105_v55 }
 0x6cb   :  { %v2656_v49 = vpop.eup %2655 }
 0x6cc   :  { %v1114_v54 = vmul.f32 %v2656_v49, %v1112_v50  ;;  %v1190_v20 = vsub.f32 1.0, %v2656_v49 }
 0x6cd   :  { %v2658_v52 = vpop.eup %2657 }
 0x6ce   :  { %v1115_v57 = vmul.f32 %v2658_v52, %v1112_v50  ;;  %v1192_v11 = vmul.f32 %v1190_v20, %v2877_v3 }
 0x6d0   :  { %v1116_v58 = vpack.c.bf16 %v1115_v57, %v1114_v54 }
 0x6d2   :  { %1118 = vrot.lane.b32.xlu1 %v1116_v58, %s2782_s0 }
 0x744   :  { %v1119_v59 = vpop.permute.xlu1 %1118 }
 0x745   :  { %2486 = vmatmul.mubr.msk.bf16.vlgmr.msra.gmra.mrb[24].mxu0 %vm275_vm1, %v1119_v59 }
 0x746   :  { %2499 = vmatprep.mubr.msk.bf16.mxu0 %vm2781_vm0, %v2780_v1 }
 0x818   :  { %v1169_v60 = vpop.f32.mrb[24].mxu0 }
 0x819   :  { %1178 = vrot.lane.b32.xlu1 %v1169_v60, %s2778_s2  ;;  %v2487_v61 = vpop.f32.mrb[25].mxu0 }
 0x81a   :  { %v1172_v7 = vpop.f32.mrb[26].mxu0 }
 0x81b   :  { %v2488_v8 = vpop.f32.mrb[27].mxu0 }
 0x81d   :  { %1180 = vrot.lane.b32.xlu1 %v1172_v7, %s2778_s2 }
 0x88b   :  { %v1179_v9 = vpop.permute.xlu1 %1178 }
 0x88c   :  { %v1184_v0 = vadd.f32 %v1179_v9, %v1034_v30  ;;  %v1191_v30 = vsub.f32 1.0, %v2658_v52 }
 0x88e   :  { %v1186_v13 = vadd.f32 %v1184_v0, %v3113_v29 }
 0x88f   :  { %v1181_v15 = vpop.permute.xlu1 %1180 }
 0x890   :  { %2659 = vtanh.f32 %v1186_v13  ;;  %v1185_v16 = vadd.f32 %v1181_v15, %v1037_v35  ;;  %v1193_v35 = vmul.f32 %v1191_v30, %v2877_v3 }
 0x892   :  { %v1187_v17 = vadd.f32 %v1185_v16, %v3113_v29 }
 0x894   :  { %2661 = vtanh.f32 %v1187_v17 }
 0x89a   :  { %v2660_v19 = vpop.eup %2659 }
 0x89b   :  { %1196 = vrot.lane.b32.xlu1 %v2660_v19, %s2778_s2 }
 0x89e   :  { %v2662_v2 = vpop.eup %2661 }
 0x89f   :  { %1198 = vrot.lane.b32.xlu1 %v2662_v2, %s2778_s2 }
 0x90d   :  { %v1197_v22 = vpop.permute.xlu1 %1196 }
 0x90e   :  { %v1202_v28 = vmul.f32 %v2656_v49, %v1197_v22 }
 0x910   :  { %v3128_v32 = vadd.f32 %v1202_v28, %v1192_v11 }
 0x911   :  { %v1199_v33 = vpop.permute.xlu1 %1198 }
 0x912   :  { %v1203_v39 = vmul.f32 %v2658_v52, %v1199_v33  ;;  %1967 = vrot.lane.b32.xlu0 %v3128_v32, %s2785_s4 }
 0x914   :  { %v3133_v40 = vadd.f32 %v1203_v39, %v1193_v35 }
 0x916   :  { %v3137_v42 = vpack.c.bf16 %v3133_v40, %v3128_v32 }
 0x918   :  { %2494 = vmatmul.mubr.msk.bf16.vlgmr.msra.gmra.mrb[28].mxu1 %vm275_vm1, %v3137_v42 }
 0x919   :  { %2505 = vmatprep.mubr.msk.bf16.mxu1 %vm2781_vm0, %v2780_v1 }
 0x9eb   :  { %v1244_v43 = vpop.f32.mrb[28].mxu1 }
 0x9ec   :  { %v2315_v44 = vpack.c.bf16 %v1244_v43, %v1244_v43  ;;  %v2495_v45 = vpop.f32.mrb[29].mxu1 }
 0x9ed   :  { %v1247_v3 = vpop.f32.mrb[30].mxu1 }
 0x9ee   :  { %1257 = vrot.lane.b32.xlu1 %v2315_v44, %s2782_s0  ;;  %v2496_v47 = vpop.f32.mrb[31].mxu1  ;;  %v2316_v48 = vpack.c.bf16 %v1247_v3, %v1247_v3  ;;  %v1348_v50 = vsel %vm332_vm2, %v2315_v44, 0 }
 0x9f0   :  { %v1391_v54 = vsel %vm332_vm2, %v2316_v48, 0 }
 0x9f2   :  { %1302 = vrot.lane.b32.xlu1 %v2316_v48, %s2782_s0 }
 0xa60   :  { %v1258_v53 = vpop.permute.xlu1 %1257 }
 0xa61   :  { %v1260_v55 = vsel %vm332_vm2, %v1258_v53, 0 }
 0xa62   :  { %2498 = vmatpush3.bf16.msra.mxu0 %v1260_v55 }
 0xa63   :  { %2509 = vmatprep.subr.bf16.mxu0 %v2780_v1 }
 0xa64   :  { %v1303_v49 = vpop.permute.xlu1 %1302 }
 0xa65   :  { %v1305_v52 = vsel %vm332_vm2, %v1303_v49, 0  ;;  %2500 = vmatmul.mubr.msk.bf16.vlgmr.msra.gmra.mrb[28].mxu0 %vm328_vm3, %v2915_v27 }
 0xa66   :  { %2504 = vmatpush3.bf16.msra.mxu1 %v1305_v52  ;;  %2510 = vmatpush3.bf16.msra.mxu0 %v1348_v50 }
 0xa67   :  { %2515 = vmatprep.subr.bf16.mxu1 %v2780_v1  ;;  %2511 = vmatprep.mubr.msk.bf16.mxu0 %vm2781_vm0, %v2780_v1 }
 0xa68   :  { %2521 = vmatprep.subr.bf16.mxu0 %v2780_v1 }
 0xa69   :  { %2506 = vmatmul.mubr.msk.bf16.vlgmr.msra.gmra.mrb[32].mxu1 %vm328_vm3, %v2924_v31 }
 0xa6a   :  { %2516 = vmatpush3.bf16.msra.mxu1 %v1391_v54  ;;  %2517 = vmatprep.mubr.msk.bf16.mxu1 %vm2781_vm0, %v2780_v1 }
 0xa6b   :  { %2529 = vmatprep.subr.bf16.mxu1 %v2780_v1 }
 0xa6d   :  { %2512 = vmatmul.mubr.msk.bf16.vlgmr.msra.gmra.mrb[32].mxu0 %vm328_vm3, %v2938_v36 }
 0xa6e   :  { %2522 = vmatpush3.bf16.msra.mxu0 %v2947_v37  ;;  %2525 = vmatprep.mubr.msk.bf16.mxu0 %vm2781_vm0, %v2780_v1 }
 0xa6f   :  { %2523 = vmatprep.subr.bf16.mxu0 %v2780_v1 }
 0xa71   :  { %2518 = vmatmul.mubr.msk.bf16.vlgmr.msra.gmra.mrb[36].mxu1 %vm328_vm3, %v2932_v34 }
 0xa72   :  { %2524 = vmatpush3.bf16.msra.mxu0 %v2953_v38  ;;  %2531 = vmatprep.mubr.msk.bf16.mxu1 %vm2781_vm0, %v2780_v1 }
 0xa73   :  { %2535 = vmatprep.subr.bf16.mxu0 %v2780_v1 }
 0xb38   :  { %v1296_v27 = vpop.f32.mrb[28].mxu0 }
 0xb39   :  { %v2501_v31 = vpop.f32.mrb[29].mxu0 }
 0xb3a   :  { %v1299_v36 = vpop.f32.mrb[30].mxu0 }
 0xb3b   :  { %v2502_v57 = vpop.f32.mrb[31].mxu0 }
 0xb3c   :  { %v1341_v37 = vpop.f32.mrb[32].mxu1 }
 0xb3d   :  { %v2507_v58 = vpop.f32.mrb[33].mxu1 }
 0xb3e   :  { %v1344_v59 = vpop.f32.mrb[34].mxu1 }
 0xb3f   :  { %v2508_v60 = vpop.f32.mrb[35].mxu1 }
 0xb40   :  { %v1384_v61 = vpop.f32.mrb[32].mxu0 }
 0xb41   :  { %v1385_v7 = vadd.f32 %v1384_v61, %v1296_v27  ;;  %v2513_v8 = vpop.f32.mrb[33].mxu0 }
 0xb42   :  { %v1387_v9 = vpop.f32.mrb[34].mxu0 }
 0xb43   :  { %v1433_v34 = vadd.f32 %v1385_v7, %v2968_v56  ;;  %v2514_v38 = vpop.f32.mrb[35].mxu0 }
 0xb44   :  { %v1427_v0 = vpop.f32.mrb[36].mxu1 }
 0xb45   :  { %2663 = vtanh.f32 %v1433_v34  ;;  %v1428_v13 = vadd.f32 %v1427_v0, %v1341_v37  ;;  %v2519_v15 = vpop.f32.mrb[37].mxu1 }
 0xb46   :  { %v1430_v16 = vpop.f32.mrb[38].mxu1 }
 0xb47   :  { %v1434_v17 = vadd.f32 %v1428_v13, %v2968_v56  ;;  %v2520_v19 = vpop.f32.mrb[39].mxu1 }
 0xb49   :  { %2665 = vtanh.f32 %v1434_v17 }
 0xb4f   :  { %v2664_v2 = vpop.eup %2663 }
 0xb50   :  { %v1437_v20 = vpack.c.bf16 %v2664_v2, %v2664_v2 }
 0xb52   :  { %v1447_v22 = vrot.slane %v1437_v20, %v2973_v10 }
 0xb53   :  { %v2666_v11 = vpop.eup %2665 }
 0xb54   :  { %v1448_v28 = vcombine.high %v1447_v22, %v1447_v22  ;;  %v1455_v30 = vrot.slane %v1447_v22, %v2973_v10  ;;  %v1438_v33 = vpack.c.bf16 %v2666_v11, %v2666_v11 }
 0xb56   :  { %v1462_v35 = vrot.slane %v1448_v28, %v2973_v10  ;;  %v1470_v39 = vrot.slane %v1438_v33, %v2973_v10  ;;  %v1463_v43 = vcombine.high %v1455_v30, %v1455_v30 }
 0xb58   :  { %v1487_v44 = vcombine.low %v1455_v30, %v1462_v35  ;;  %v1471_v45 = vcombine.high %v1470_v39, %v1470_v39  ;;  %v1478_v56 = vrot.slane %v1470_v39, %v2973_v10 }
 0xb5a   :  { %v1485_v3 = vrot.slane %v1471_v45, %v2973_v10  ;;  %v1486_v47 = vcombine.high %v1478_v56, %v1478_v56  ;;  %v1488_v48 = vcombine.low %v1463_v43, %v1478_v56  ;;  %v1496_v53 = vrot.slane %v1487_v44, %v2973_v10 }
 0xb5c   :  { %v1489_v55 = vcombine.low %v1485_v3, %v1486_v47  ;;  %v1503_v49 = vrot.slane %v1488_v48, %v2973_v10 }
 0xb5e   :  { %v1510_v50 = vrot.slane %v1489_v55, %v2973_v10  ;;  %v1511_v52 = vcombine.low %v1496_v53, %v1503_v49 }
 0xb60   :  { %v1518_v54 = vrot.slane %v1511_v52, %v2973_v10  ;;  %v1525_v27 = vrot.slane %v1510_v50, %v2973_v10 }
 0xb62   :  { %v1526_v31 = vcombine.low %v1518_v54, %v1525_v27 }
 0xb64   :  { %2526 = vmatmul.mubr.msk.bf16.vlgmr.msra.gmra.mrb[36].mxu0 %vm275_vm1, %v1526_v31 }
 0xb65   :  { %2537 = vmatprep.mubr.msk.bf16.mxu0 %vm2781_vm0, %v2780_v1 }
 0xc37   :  { %v1564_v36 = vpop.f32.mrb[36].mxu0 }
 0xc38   :  { %v1573_v57 = vcombine.high %v1564_v36, %v1564_v36  ;;  %v1580_v37 = vrot.slane %v1564_v36, %v2990_v46  ;;  %v2527_v58 = vpop.f32.mrb[37].mxu0 }
 0xc39   :  { %v1567_v59 = vpop.f32.mrb[38].mxu0 }
 0xc3a   :  { %v1587_v60 = vrot.slane %v1573_v57, %v2990_v46  ;;  %v1588_v61 = vcombine.high %v1580_v37, %v1580_v37  ;;  %v1596_v7 = vrot.slane %v1567_v59, %v2990_v46  ;;  %v2528_v8 = vpop.f32.mrb[39].mxu0 }
 0xc3c   :  { %v1598_v9 = vcombine.low %v1580_v37, %v1588_v61  ;;  %v1589_v10 = vcombine.high %v1587_v60, %v1587_v60  ;;  %v1597_v34 = vcombine.high %v1596_v7, %v1596_v7  ;;  %v1612_v0 = vrot.slane %v1587_v60, %v2990_v46 }
 0xc3e   :  { %v1605_v38 = vrot.slane %v1598_v9, %v2990_v46  ;;  %v1614_v13 = vcombine.low %v1589_v10, %v1596_v7  ;;  %v1628_v16 = vrot.slane %v1597_v34, %v2990_v46 }
 0xc40   :  { %v1621_v15 = vrot.slane %v1614_v13, %v2990_v46  ;;  %v1613_v17 = vcombine.low %v1605_v38, %v1612_v0 }
 0xc42   :  { %v1632_v19 = vpack.c.bf16 %v1613_v17, %v1613_v17  ;;  %v1629_v2 = vcombine.low %v1621_v15, %v1628_v16 }
 0xc44   :  { %1635 = vrot.lane.b32.xlu1 %v1632_v19, %s2782_s0  ;;  %v1633_v20 = vpack.c.bf16 %v1629_v2, %v1629_v2  ;;  %v1727_v30 = vsel %vm736_vm4, %v1632_v19, 0 }
 0xc46   :  { %v1770_v33 = vsel %vm736_vm4, %v1633_v20, 0 }
 0xc48   :  { %1681 = vrot.lane.b32.xlu1 %v1633_v20, %s2782_s0  ;;  %v1968_v20 = vpop.permute.xlu0 %1967 }
 0xc4c   :  { %1969 = vrot.lane.b32.xlu1 %v3133_v40, %s2785_s4 }
 0xcb6   :  { %v1636_v22 = vpop.permute.xlu1 %1635 }
 0xcb7   :  { %v1638_v11 = vsel %vm736_vm4, %v1636_v22, 0 }
 0xcb8   :  { %2530 = vmatpush3.bf16.msra.mxu1 %v1638_v11 }
 0xcb9   :  { %2541 = vmatprep.subr.bf16.mxu1 %v2780_v1 }
 0xcba   :  { %v1682_v28 = vpop.permute.xlu1 %1681 }
 0xcbb   :  { %v1684_v46 = vsel %vm736_vm4, %v1682_v28, 0  ;;  %2532 = vmatmul.mubr.msk.bf16.vlgmr.msra.gmra.mrb[40].mxu1 %vm732_vm5, %v3003_v18 }
 0xcbc   :  { %2536 = vmatpush3.bf16.msra.mxu0 %v1684_v46  ;;  %2542 = vmatpush3.bf16.msra.mxu1 %v1727_v30 }
 0xcbd   :  { %2547 = vmatprep.subr.bf16.mxu0 %v2780_v1  ;;  %2543 = vmatprep.mubr.msk.bf16.mxu1 %vm2781_vm0, %v2780_v1 }
 0xcbe   :  { %2553 = vmatprep.subr.bf16.mxu1 %v2780_v1  ;;  %v1970_v22 = vpop.permute.xlu1 %1969 }
 0xcbf   :  { %2538 = vmatmul.mubr.msk.bf16.vlgmr.msra.gmra.mrb[40].mxu0 %vm732_vm5, %v3008_v21 }
 0xcc0   :  { %2548 = vmatpush3.bf16.msra.mxu0 %v1770_v33  ;;  %2549 = vmatprep.mubr.msk.bf16.mxu0 %vm2781_vm0, %v2780_v1 }
 0xcc1   :  { %2561 = vmatprep.subr.bf16.mxu0 %v2780_v1 }
 0xcc3   :  { %2544 = vmatmul.mubr.msk.bf16.vlgmr.msra.gmra.mrb[44].mxu1 %vm732_vm5, %v3026_v24 }
 0xcc4   :  { %2554 = vmatpush3.bf16.msra.mxu1 %v3041_v23  ;;  %2557 = vmatprep.mubr.msk.bf16.mxu1 %vm2781_vm0, %v2780_v1 }
 0xcc5   :  { %2555 = vmatprep.subr.bf16.mxu1 %v2780_v1 }
 0xcc7   :  { %2550 = vmatmul.mubr.msk.bf16.vlgmr.msra.gmra.mrb[44].mxu0 %vm732_vm5, %v3031_v25 }
 0xcc8   :  { %2556 = vmatpush3.bf16.msra.mxu1 %v3044_v26  ;;  %2562 = vmatpush3.bf16.msra.mxu0 %v3066_v63 }
 0xcc9   :  { %2569 = vmatprep.subr.bf16.mxu1 %v2780_v1  ;;  %2563 = vmatprep.subr.bf16.mxu0 %v2780_v1 }
 0xcca   :  { %2565 = vmatprep.mubr.msk.bf16.mxu0 %vm2781_vm0, %v2780_v1 }
 0xccc   :  { %2564 = vmatpush3.bf16.msra.mxu0 %v3078_v5 }
 0xccd   :  { %2577 = vmatprep.subr.bf16.mxu0 %v2780_v1 }
 0xd8e   :  { %v1674_v18 = vpop.f32.mrb[40].mxu1 }
 0xd8f   :  { %v2533_v21 = vpop.f32.mrb[41].mxu1 }
 0xd90   :  { %v1677_v24 = vpop.f32.mrb[42].mxu1 }
 0xd91   :  { %v2534_v23 = vpop.f32.mrb[43].mxu1 }
 0xd92   :  { %v1720_v25 = vpop.f32.mrb[40].mxu0 }
 0xd93   :  { %v2539_v35 = vpop.f32.mrb[41].mxu0 }
 0xd94   :  { %v1723_v26 = vpop.f32.mrb[42].mxu0 }
 0xd95   :  { %v2540_v39 = vpop.f32.mrb[43].mxu0 }
 0xd96   :  { %v1763_v63 = vpop.f32.mrb[44].mxu1 }
 0xd97   :  { %v1764_v43 = vadd.f32 %v1763_v63, %v1674_v18  ;;  %v2545_v44 = vpop.f32.mrb[45].mxu1 }
 0xd98   :  { %v1766_v45 = vpop.f32.mrb[46].mxu1  ;;  %v2149_v44 = vld [vmem:[%s3304_s7] sm:$0xff] }
 0xd99   :  { %v2546_v56 = vpop.f32.mrb[47].mxu1  ;;  %v1812_v3 = vadd.f32 %v1764_v43, %v3051_v41  ;;  %v2786_v43 = vmov 0.0|0.0   ;;  %v2150_v45 = vld [vmem:[%s3304_s7 + $0x8] sm:$0xff] }
 0xd9a   :  { %v1806_v47 = vpop.f32.mrb[44].mxu0  ;;  %v2151_v56 = vld [vmem:[%s3304_s7 + $0x10] sm:$0xff] }
 0xd9b   :  { %v1807_v48 = vadd.f32 %v1806_v47, %v1720_v25  ;;  %v2551_v5 = vpop.f32.mrb[45].mxu0  ;;  %2667 = vtanh.f32 %v1812_v3  ;;  %v2607_v47 = vpack.c.bf16 %v2150_v45, %v2149_v44 }
 0xd9c   :  { %v1809_v53 = vpop.f32.mrb[46].mxu0 }
 0xd9d   :  { %v1813_v55 = vadd.f32 %v1807_v48, %v3051_v41  ;;  %v2552_v49 = vpop.f32.mrb[47].mxu0 }
 0xd9e   :  { %v2059_v49 = vand.u32 127, %v250_v51 }
 0xd9f   :  { %2669 = vtanh.f32 %v1813_v55 }
 0xda5   :  { %v2668_v50 = vpop.eup %2667 }
 0xda9   :  { %v2670_v52 = vpop.eup %2669 }
 0xdaa   :  { %v1816_v54 = vpack.c.bf16 %v2670_v52, %v2668_v50 }
 0xdac   :  { %2558 = vmatmul.mubr.msk.bf16.vlgmr.msra.gmra.mrb[48].mxu1 %vm275_vm1, %v1816_v54  ;;  %v2069_v54 = vstv %s2068_s3 }
 0xdad   :  { %2570 = vmatpush3.bf16.msra.mxu1 %v3061_v62  ;;  %2573 = vmatprep.mubr.msk.bf16.mxu1 %vm2781_vm0, %v2780_v1  ;;  %vm2070_vm7 = vcmp.eq.s32.totalorder %v2059_v49, %v2069_v54 }
 0xdae   :  { %2571 = vmatprep.subr.bf16.mxu1 %v2780_v1 }
 0xdb1   :  { %2572 = vmatpush3.bf16.msra.mxu1 %v3073_v4 }
 0xdb2   :  { %2603 = vmatprep.subr.bf16.mxu1 %v2786_v43 }
 0xdb4   :  { %2574 = vmatmul.mubr.msk.bf16.vlgmr.msra.gmra.mrb[52].mxu1 %vm275_vm1, %v3137_v42 }
 0xdb5   :  { %2589 = vmatprep.mubr.msk.f32.mxu1 %vm2781_vm0, %v2780_v1 }
 0xe7f   :  { %v1854_v41 = vpop.f32.mrb[48].mxu1 }
 0xe80   :  { %v1855_v27 = vadd.f32 %v1854_v41, %v3096_v6  ;;  %v2559_v31 = vpop.f32.mrb[49].mxu1 }
 0xe81   :  { %v1857_v36 = vpop.f32.mrb[50].mxu1 }
 0xe82   :  { %v1858_v62 = vadd.f32 %v1857_v36, %v3096_v6  ;;  %v2560_v57 = vpop.f32.mrb[51].mxu1  ;;  %2671 = vtanh.f32 %v1855_v27 }
 0xe84   :  { %2673 = vtanh.f32 %v1858_v62 }
 0xe87   :  { %v1942_v37 = vpop.f32.mrb[52].mxu1 }
 0xe88   :  { %v2575_v58 = vpop.f32.mrb[53].mxu1 }
 0xe89   :  { %v1945_v59 = vpop.f32.mrb[54].mxu1 }
 0xe8a   :  { %v2576_v4 = vpop.f32.mrb[55].mxu1 }
 0xe8c   :  { %v2672_v60 = vpop.eup %2671 }
 0xe8e   :  { %v2674_v61 = vpop.eup %2673 }
 0xe8f   :  { %v1863_v42 = vpack.c.bf16 %v2674_v61, %v2672_v60 }
 0xe91   :  { %2566 = vmatmul.mubr.msk.bf16.vlgmr.msra.gmra.mrb[48].mxu0 %vm275_vm1, %v1863_v42 }
 0xe92   :  { %2578 = vmatpush3.bf16.msra.mxu0 %v3103_v12  ;;  %2581 = vmatprep.mubr.msk.bf16.mxu0 %vm2781_vm0, %v2780_v1 }
 0xe93   :  { %2579 = vmatprep.subr.bf16.mxu0 %v2780_v1 }
 0xe96   :  { %2580 = vmatpush3.bf16.msra.mxu0 %v3106_v14 }
 0xe97   :  { %2606 = vmatprep.subr.bf16.mxu0 %v2786_v43 }
 0xf64   :  { %v1901_v6 = vpop.f32.mrb[48].mxu0 }
 0xf65   :  { %v1949_v7 = vadd.f32 %v1942_v37, %v1901_v6  ;;  %v2567_v8 = vpop.f32.mrb[49].mxu0 }
 0xf66   :  { %v1904_v9 = vpop.f32.mrb[50].mxu0 }
 0xf67   :  { %v1951_v10 = vadd.f32 %v1949_v7, %v3113_v29  ;;  %v1950_v34 = vadd.f32 %v1945_v59, %v1904_v9  ;;  %v2568_v38 = vpop.f32.mrb[51].mxu0  ;;  %v2309_v59 = vsel %vm2070_vm7, 1.0, %v2780_v1 }
 0xf69   :  { %v2303_v0 = vmul.f32 -1.442695, %v1951_v10  ;;  %v1952_v13 = vadd.f32 %v1950_v34, %v3113_v29 }
 0xf6b   :  { %2675 = vpow2.f32 %v2303_v0  ;;  %v2304_v12 = vmul.f32 -1.442695, %v1952_v13 }
 0xf6d   :  { %2677 = vpow2.f32 %v2304_v12 }
 0xf75   :  { %v2676_v15 = vpop.eup %2675 }
 0xf76   :  { %v1959_v16 = vadd.f32 1.0, %v2676_v15 }
 0xf77   :  { %v2678_v17 = vpop.eup %2677 }
 0xf78   :  { %2679 = vrcp.f32 %v1959_v16  ;;  %v1960_v19 = vadd.f32 1.0, %v2678_v17 }
 0xf7a   :  { %2681 = vrcp.f32 %v1960_v19 }
 0xf82   :  { %v2680_v14 = vpop.eup %2679 }
 0xf83   :  { %v1973_v11 = vmul.f32 %v2680_v14, %v1968_v20  ;;  %v2037_v53 = vsub.f32 1.0, %v2680_v14 }
 0xf84   :  { %v2682_v2 = vpop.eup %2681 }
 0xf85   :  { %v1974_v28 = vmul.f32 %v2682_v2, %v1970_v22  ;;  %v2038_v55 = vsub.f32 1.0, %v2682_v2  ;;  %v2039_v27 = vmul.f32 %v2037_v53, %v3128_v32 }
 0xf87   :  { %v1975_v46 = vpack.c.bf16 %v1974_v28, %v1973_v11  ;;  %v2040_v36 = vmul.f32 %v2038_v55, %v3133_v40  ;;  %v2311_v40 = vld [vmem:[%s3304_s7 + $0x20] ss:$0 sm:$0xff] }
 0xf89   :  { %1977 = vrot.lane.b32.xlu0 %v1975_v46, %s2782_s0  ;;  %s2055_s0 = sadd.s32 %s2054_s18, %s2053_s5 }
 0xf8a   :  { %s2056_s21 = sxor.u32 %s2055_s0, %s2054_s18 }
 0xf8b   :  { %s2306_s23 = sadd.s32 4294967295, %s2056_s21 }
 0xf8c   :  { %v2060_v52 = vstv %s2306_s23 }
 0xf8d   :  { %vm2061_vm6 = vcmp.eq.s32.totalorder %v2059_v49, %v2060_v52 }
 0xf8e   :  { %v2307_v58 = vsel %vm2061_vm6, 1.0, %v2780_v1 }
 0xf8f   :  { %v2074_v4 = vsel %vm2073_vm8, %v2307_v58, %v2309_v59 }
 0xffb   :  { %v1978_v30 = vpop.permute.xlu0 %1977 }
 0xffc   :  { %2582 = vmatmul.mubr.msk.bf16.vlgmr.msra.gmra.mrb[52].mxu0 %vm275_vm1, %v1978_v30 }
 0xffd   :  { %2600 = vmatprep.mubr.msk.f32.mxu0 %vm2781_vm0, %v2780_v1  ;;  %2608 = vmatpush3.bf16.msra.mxu0 %v2607_v47 }
 0xffe   :  { %2609 = vmatprep.subr.bf16.mxu0 %v2786_v43 }
0x10cf   :  { %v2016_v33 = vpop.f32.mrb[52].mxu0 }
0x10d0   :  { %2025 = vrot.lane.b32.xlu1 %v2016_v33, %s2778_s2  ;;  %v2583_v18 = vpop.f32.mrb[53].mxu0 }
0x10d1   :  { %v2019_v21 = vpop.f32.mrb[54].mxu0 }
0x10d2   :  { %2027 = vrot.lane.b32.xlu0 %v2019_v21, %s2778_s2  ;;  %v2584_v24 = vpop.f32.mrb[55].mxu0 }
0x1142   :  { %v2026_v23 = vpop.permute.xlu1 %2025 }
0x1143   :  { %v2031_v25 = vadd.f32 %v2026_v23, %v1901_v6 }
0x1144   :  { %v2028_v35 = vpop.permute.xlu0 %2027 }
0x1145   :  { %v2033_v26 = vadd.f32 %v2031_v25, %v3113_v29  ;;  %v2032_v39 = vadd.f32 %v2028_v35, %v1904_v9 }
0x1147   :  { %2683 = vtanh.f32 %v2033_v26  ;;  %v2034_v63 = vadd.f32 %v2032_v39, %v3113_v29  ;;  %v2152_v29 = vld [vmem:[%s3304_s7 + $0x18] sm:$0xff] }
0x1148   :  { %v2610_v5 = vpack.c.bf16 %v2152_v29, %v2151_v56 }
0x1149   :  { %2685 = vtanh.f32 %v2034_v63 }
0x114a   :  { %2611 = vmatpush3.bf16.msra.mxu0 %v2610_v5 }
0x1151   :  { %v2684_v3 = vpop.eup %2683 }
0x1152   :  { %2043 = vrot.lane.b32.xlu1 %v2684_v3, %s2778_s2 }
0x1153   :  { %v2686_v48 = vpop.eup %2685 }
0x1154   :  { %2045 = vrot.lane.b32.xlu0 %v2686_v48, %s2778_s2 }
0x11c4   :  { %v2044_v50 = vpop.permute.xlu1 %2043 }
0x11c5   :  { %v2049_v41 = vmul.f32 %v2680_v14, %v2044_v50 }
0x11c6   :  { %v2046_v31 = vpop.permute.xlu0 %2045 }
0x11c7   :  { %v2050_v62 = vmul.f32 %v2682_v2, %v2046_v31  ;;  %v2051_v57 = vadd.f32 %v2049_v41, %v2039_v27 }
0x11c9   :  { %v2052_v37 = vadd.f32 %v2050_v62, %v2040_v36 }
0x11cb   :  { %v2604_v51 = vpack.c.bf16 %v2052_v37, %v2051_v57 }
0x11cd   :  { %2605 = vmatpush3.bf16.msra.mxu1 %v2604_v51 }
0x11d0   :  { %2590 = vmatmul.mubr.msk.f32.vlgmr.msra.gmra.mrb[56].mxu1 %vm2075_vm9, %v2074_v4 }
0x12a3   :  { %v2145_v60 = vpop.f32.mrb[56].mxu1 }
0x12a4   :  { %v2591_v32 = vpop.f32.mrb[57].mxu1  ;;  %2601 = vmatmul.mubr.msk.f32.vlgmr.msra.gmra.mrb[56].mxu0 %vm275_vm1, %v2145_v60 }
0x1377   :  { %v2227_v61 = vpop.f32.mrb[56].mxu0 }
0x1378   :  { %v2228_v42 = vadd.f32 %v2311_v40, %v2227_v61  ;;  %v2602_v1 = vpop.f32.mrb[57].mxu0 }
0x137a   :  { %2232 = vst.msk [vmem:[#allocation9] sm:$0x3] %vm2231_vm10, %v2228_v42 }
0x137b   :  { %2754 = shalt.err (!%p2751_p11)
}
0x137c   :  { %s2755_s29 = scalar_lea.hbm %s3305_s8, 32 }
0x137d   :  { %p2756_p12 = scmp.ne.s32.totalorder %s3305_s8, %s2755_s29  ;;  %p2759_p13 = scmp.lt.u32.totalorder %s2755_s29, %s3305_s8 }
0x137f   :  { %p2761_p0 = pnand %p2759_p13, %p2756_p12 }
0x1381   :  { %2764 = shalt.err (!%p2761_p0)
}
0x1382   :  { %2242 = dma.vmem_to_hbm [thread:$0]  %s2240_s25, 32, %s3305_s8, [#allocation4]  }
0x1383   :  { %2771 = dma.done.wait [#allocation4], 32  }
0x1384   :  { %2772 = vsyncadd [#allocation4], 4294967264 }
0x1385   :  { %2246 = vsyncpa [#allocation3], 1 }
0x1386   :  { %2247 = vsyncpa [#allocation8], 1 }
0x1387   :  { %2248 = vsyncpa [#allocation4], 1 }
0x1388   :  { %2249 = vsyncpa [#allocation5], 1 }

</bundles_post_ra>
